<compile_context>
chip_gen: v5e
topology: v5e:2x2
jax: 0.10.0
libtpu: 0.0.40
codegen_flags: <defaults>
</compile_context>

<pallas_src>
import numpy as np
import jax
import jax.numpy as jnp
from jax.experimental import pallas as pl
from jax.experimental.pallas import tpu as pltpu


def _pick_window_batch(b_, base, max_wb):
    """Largest window batch WB dividing both `base` and `b_`.

    Preference (v7x shards the "parallel" grid axis across its 2 TensorCores):
      1. largest WB giving an EVEN number of grid steps (>= 2)
      2. largest WB giving >= 2 grid steps
      3. largest WB overall
    """
    cap = max(1, min(max_wb, base, b_))
    divs = [d for d in range(1, cap + 1) if base % d == 0 and b_ % d == 0]
    even = [d for d in divs if (b_ // d) >= 2 and (b_ // d) % 2 == 0]
    if even:
        return max(even)
    multi = [d for d in divs if (b_ // d) >= 2]
    if multi:
        return max(multi)
    return max(divs)


def _make_kernel(scale, num_heads, head_dim, n_pad, c, c_pad, wb, nblk,
                 mxu_dtype, has_mask):
    """One grid step = WB windows, channels-last throughout."""

    def _body(qkv_ref, bias_ref, mask_ref, pw_ref, pb_ref, o_ref):
        if has_mask:
            if nblk == 1:
                m = mask_ref[...]                              # (wb, Np, Np) f32
            else:
                start = pl.multiple_of((pl.program_id(0) % nblk) * wb, wb)
                m = mask_ref[pl.ds(start, wb)]                 # resident mask slice
        pw = pw_ref[...]                                       # (C, C_pad), mxu dtype

        # TODO(synk): for large head counts (H >= ~16) move heads onto a second
        # "arbitrary" grid axis with an accumulator scratch instead of this
        # static unroll (bounds vreg live ranges and compile time).
        heads = []
        for h in range(num_heads):                             # static unroll, H small
            d0 = h * head_dim
            qh = qkv_ref[:, :, d0:d0 + head_dim].astype(mxu_dtype)          # (wb,Np,D)
            kh = qkv_ref[:, :, c + d0:c + d0 + head_dim].astype(mxu_dtype)
            vh = qkv_ref[:, :, 2 * c + d0:2 * c + d0 + head_dim].astype(mxu_dtype)

            s = jnp.einsum('bnd,bmd->bnm', qh, kh,
                           preferred_element_type=jnp.float32)              # (wb,Np,Np)
            s = s * scale + bias_ref[h][None, :, :]            # rel-pos bias (f32)
            if has_mask:
                s = s + m                                      # additive window mask

            # numerically-stable softmax in f32; exact reciprocal (EUP slot).
            s = s - jnp.max(s, axis=-1, keepdims=True)
            p = jnp.exp(s)
            p = p * pl.reciprocal(jnp.sum(p, axis=-1, keepdims=True), approx=False)

            heads.append(jnp.einsum('bnm,bmd->bnd', p.astype(mxu_dtype), vh,
                                    preferred_element_type=jnp.float32))    # (wb,Np,D)

        # Head concat -> ONE (WB*Np, C) x (C, C_pad) projection matmul (K = C).
        x = jnp.concatenate(heads, axis=-1).reshape(wb * n_pad, c)
        y = jnp.dot(x.astype(mxu_dtype), pw,
                    preferred_element_type=jnp.float32)                     # (WB*Np,C_pad)
        y = y + pb_ref[...]                                    # (1, C_pad) broadcast
        o_ref[...] = y.reshape(wb, n_pad, c_pad).astype(o_ref.dtype)

    if has_mask:
        def kernel(qkv_ref, bias_ref, mask_ref, pw_ref, pb_ref, o_ref):
            _body(qkv_ref, bias_ref, mask_ref, pw_ref, pb_ref, o_ref)
    else:
        def kernel(qkv_ref, bias_ref, pw_ref, pb_ref, o_ref):
            _body(qkv_ref, bias_ref, None, pw_ref, pb_ref, o_ref)
    return kernel


def window_attention_pallas(qkv, rpi, bias_table, proj_w, proj_b,
                            window_size, num_heads, mask=None,
                            mxu_dtype=None, out_dtype=None, max_window_batch=16):
    b_, n, c3 = qkv.shape
    c = c3 // 3
    hd = c // num_heads
    scale = hd ** (-0.5)
    if mxu_dtype is None:
        mxu_dtype = qkv.dtype
    if out_dtype is None:
        out_dtype = qkv.dtype

    # sublane / lane friendly padding
    n_pad = ((n + 7) // 8) * 8            # token dim -> multiple of 8 (sublanes)
    c_pad = ((c + 127) // 128) * 128      # output channel dim -> lane-dense stores

    # relative position bias gather (data-dependent gather kept in JAX glue)
    rpb = bias_table[rpi.reshape(-1)].reshape(n, n, num_heads)
    rpb = jnp.transpose(rpb, (2, 0, 1)).astype(jnp.float32)            # (H, N, N)
    if n_pad != n:
        rpb = jnp.pad(rpb, ((0, 0), (0, n_pad - n), (0, n_pad - n)))
        # mask padded *key* columns so softmax ignores them (padded rows are discarded)
        key_pad = jnp.where(jnp.arange(n_pad) >= n, -1e9, 0.0).astype(jnp.float32)
        rpb = rpb + key_pad[None, None, :]

    # PyTorch Linear: y = x @ W.T + b  (output channels zero-padded to c_pad)
    pw = jnp.pad(proj_w.T, ((0, 0), (0, c_pad - c))).astype(mxu_dtype)      # (C, C_pad)
    pb = jnp.pad(proj_b.reshape(1, c), ((0, 0), (0, c_pad - c))).astype(jnp.float32)

    has_mask = mask is not None
    if has_mask:
        nw = mask.shape[0]
        assert b_ % nw == 0, "b_ must be a multiple of num_windows"
        wb = _pick_window_batch(b_, nw, max_window_batch)
        # windows are batch-major consecutive and wb | nW, so the per-step mask
        # rows are the contiguous slice [(i % nblk)*wb, +wb) with no wrap.
        assert nw % wb == 0
        nblk = nw // wb
        mask_f = mask.astype(jnp.float32)
        if n_pad != n:
            mask_f = jnp.pad(mask_f, ((0, 0), (0, n_pad - n), (0, n_pad - n)))
    else:
        nw = 0
        nblk = 1
        wb = _pick_window_batch(b_, b_, max_window_batch)

    # qkv streamed at the MXU dtype (bf16 halves HBM traffic on this mem-bound kernel)
    qkv_s = qkv
    if n_pad != n:
        qkv_s = jnp.pad(qkv_s, ((0, 0), (0, n_pad - n), (0, 0)))
    qkv_s = qkv_s.astype(mxu_dtype)

    grid = (b_ // wb,)
    kernel = _make_kernel(scale, num_heads, hd, n_pad, c, c_pad, wb, nblk,
                          mxu_dtype, has_mask)

    in_specs = [
        pl.BlockSpec((wb, n_pad, 3 * c), lambda i: (i, 0, 0)),          # qkv (streamed)
        pl.BlockSpec((num_heads, n_pad, n_pad), lambda i: (0, 0, 0)),   # rel-pos bias (resident)
    ]
    args = [qkv_s, rpb]
    if has_mask:
        # full mask resident in VMEM (constant index_map -> fetched once), sliced in-kernel
        in_specs.append(pl.BlockSpec((nw, n_pad, n_pad), lambda i: (0, 0, 0)))
        args.append(mask_f)
    in_specs += [
        pl.BlockSpec((c, c_pad), lambda i: (0, 0)),                     # proj weight (resident)
        pl.BlockSpec((1, c_pad), lambda i: (0, 0)),                     # proj bias (resident)
    ]
    args += [pw, pb]

    # explicit VMEM budget (v5e default scoped limit is 16 MiB; v7x has 64 MiB physical)
    isz = lambda dt: jnp.dtype(dt).itemsize
    qkv_blk = wb * n_pad * 3 * c * isz(mxu_dtype)
    out_blk = wb * n_pad * c_pad * isz(out_dtype)
    resident = (num_heads * n_pad * n_pad * 4 + c * c_pad * isz(mxu_dtype) + c_pad * 4
                + (nw * n_pad * n_pad * 4 if has_mask else 0))
    live = wb * n_pad * (2 * n_pad + c + c_pad) * 4      # scores/probs/concat/proj f32 temps
    need = 2 * (qkv_blk + out_blk) + resident + live
    vmem_limit = int(min(max(2 * need, 16 << 20), 64 << 20))

    out = pl.pallas_call(
        kernel,
        out_shape=jax.ShapeDtypeStruct((b_, n_pad, c_pad), out_dtype),
        grid=grid,
        in_specs=in_specs,
        out_specs=pl.BlockSpec((wb, n_pad, c_pad), lambda i: (i, 0, 0)),
        compiler_params=pltpu.CompilerParams(
            dimension_semantics=("parallel",),
            vmem_limit_bytes=vmem_limit),
    )(*args)
    if n_pad != n or c_pad != c:
        out = out[:, :n, :c]
    return out


def window_attention_ref(qkv, rpi, bias_table, proj_w, proj_b,
                         window_size, num_heads, mask=None):
    """Pure-JAX reference matching the PyTorch forward semantics (f32-accurate matmuls)."""
    with jax.default_matmul_precision("float32"):
        b_, n, c3 = qkv.shape
        c = c3 // 3
        hd = c // num_heads
        scale = hd ** (-0.5)
        qkv_r = qkv.reshape(b_, n, 3, num_heads, hd).transpose(2, 0, 3, 1, 4)
        q, k, v = qkv_r[0] * scale, qkv_r[1], qkv_r[2]
        attn = q @ jnp.swapaxes(k, -2, -1)
        rpb = bias_table[rpi.reshape(-1)].reshape(n, n, num_heads).transpose(2, 0, 1)
        attn = attn + rpb[None]
        if mask is not None:
            nw = mask.shape[0]
            attn = attn.reshape(b_ // nw, nw, num_heads, n, n) + mask[None, :, None]
            attn = attn.reshape(-1, num_heads, n, n)
        attn = jax.nn.softmax(attn, axis=-1)
        x = jnp.swapaxes(attn @ v, 1, 2).reshape(b_, n, c)
        return x @ proj_w.T + proj_b


def make_relative_position_index(window_size):
    wh, ww = window_size
    coords = np.stack(np.meshgrid(np.arange(wh), np.arange(ww), indexing='ij'))
    coords_flatten = coords.reshape(2, -1)                             # (2, N)
    rel = coords_flatten[:, :, None] - coords_flatten[:, None, :]      # (2, N, N)
    rel = rel.transpose(1, 2, 0).copy()                                # (N, N, 2)
    rel[:, :, 0] += wh - 1
    rel[:, :, 1] += ww - 1
    rel[:, :, 0] *= 2 * ww - 1
    return rel.sum(-1).astype(np.int32)                                # (N, N)


if __name__ == "__main__":
    dim = 32
    num_heads = 4
    window_size = (4, 4)
    n = window_size[0] * window_size[1]   # 16 tokens per window
    nw = 4                                # number of windows
    batch = 2
    b_ = batch * nw                       # 8

    key = jax.random.PRNGKey(0)
    k_qkv, k_tbl, k_pw, k_pb, k_msk = jax.random.split(key, 5)

    qkv = jax.random.normal(k_qkv, (b_, n, 3 * dim), dtype=jnp.float32)
    rpi = jnp.asarray(make_relative_position_index(window_size))
    bias_table = 0.02 * jax.random.truncated_normal(
        k_tbl, -2.0, 2.0,
        ((2 * window_size[0] - 1) * (2 * window_size[1] - 1), num_heads),
        dtype=jnp.float32)
    proj_w = (1.0 / np.sqrt(dim)) * jax.random.normal(k_pw, (dim, dim), dtype=jnp.float32)
    proj_b = 0.01 * jax.random.normal(k_pb, (dim,), dtype=jnp.float32)
    # 0 / -100 additive attention mask like shifted-window masking
    mask = jnp.where(jax.random.bernoulli(k_msk, 0.3, (nw, n, n)),
                     jnp.float32(-100.0), jnp.float32(0.0))

    ref = window_attention_ref(qkv, rpi, bias_table, proj_w, proj_b,
                               window_size, num_heads, mask=mask)
    ref_nm = window_attention_ref(qkv, rpi, bias_table, proj_w, proj_b,
                                  window_size, num_heads, mask=None)

    # f32 path with mask (resident mask, nblk == 1 here).  Tolerance budgets for
    # the TPU backend's default f32-matmul emulation (bf16 passes) inside the kernel.
    out = jax.block_until_ready(
        window_attention_pallas(qkv, rpi, bias_table, proj_w, proj_b,
                                window_size, num_heads, mask=mask))
    np.testing.assert_allclose(np.asarray(out), np.asarray(ref), rtol=1e-2, atol=1e-2)

    # f32 path without mask (dedicated kernel variant, no mask operand at all)
    out_nm = jax.block_until_ready(
        window_attention_pallas(qkv, rpi, bias_table, proj_w, proj_b,
                                window_size, num_heads, mask=None))
    np.testing.assert_allclose(np.asarray(out_nm), np.asarray(ref_nm),
                               rtol=1e-2, atol=1e-2)

    # f32 path with a smaller window batch -> exercises the dynamic in-kernel mask slice
    out_wb2 = jax.block_until_ready(
        window_attention_pallas(qkv, rpi, bias_table, proj_w, proj_b,
                                window_size, num_heads, mask=mask,
                                max_window_batch=2))
    np.testing.assert_allclose(np.asarray(out_wb2), np.asarray(ref), rtol=1e-2, atol=1e-2)

    # bf16 streaming path: qkv streamed + MXU operands + output all in bf16
    # (softmax / bias / mask / accumulation stay f32), looser tolerance.
    out_bf = jax.block_until_ready(
        window_attention_pallas(qkv, rpi, bias_table, proj_w, proj_b,
                                window_size, num_heads, mask=mask,
                                mxu_dtype=jnp.bfloat16, out_dtype=jnp.bfloat16))
    np.testing.assert_allclose(np.asarray(out_bf.astype(jnp.float32)), np.asarray(ref),
                               rtol=5e-2, atol=5e-2)

    print("KERNEL_OK")
</pallas_src>

<mosaic_0001>
module attributes {stable_mosaic.version = 11 : i64} {
  func.func @kernel(%arg0: i32, %arg1: memref<4x16x96xf32, #tpu.memory_space<vmem>>, %arg2: memref<4x16x16xf32, #tpu.memory_space<vmem>>, %arg3: memref<4x16x16xf32, #tpu.memory_space<vmem>>, %arg4: memref<32x128xf32, #tpu.memory_space<vmem>>, %arg5: memref<1x128xf32, #tpu.memory_space<vmem>>, %arg6: memref<4x16x128xf32, #tpu.memory_space<vmem>>) attributes {dimension_semantics = [#tpu.dimension_semantics<parallel>], iteration_bounds = array<i64: 2>, scalar_prefetch = 0 : i64, scratch_operands = 0 : i64, tpu.core_type = #tpu.core_type<tc>, window_params = [{transform_indices = @transform_0, window_bounds = array<i64: 4, 16, 96>}, {pipeline_mode = #tpu.pipeline_mode<synchronous>, transform_indices = @transform_1, window_bounds = array<i64: 4, 16, 16>}, {pipeline_mode = #tpu.pipeline_mode<synchronous>, transform_indices = @transform_2, window_bounds = array<i64: 4, 16, 16>}, {pipeline_mode = #tpu.pipeline_mode<synchronous>, transform_indices = @transform_3, window_bounds = array<i64: 32, 128>}, {pipeline_mode = #tpu.pipeline_mode<synchronous>, transform_indices = @transform_4, window_bounds = array<i64: 1, 128>}, {transform_indices = @transform_5, window_bounds = array<i64: 4, 16, 128>}]} {
    %c0 = arith.constant 0 : index
    %c0_0 = arith.constant 0 : index
    %c0_1 = arith.constant 0 : index
    %0 = vector.load %arg3[%c0, %c0_0, %c0_1] : memref<4x16x16xf32, #tpu.memory_space<vmem>>, vector<4x16x16xf32>
    %c0_2 = arith.constant 0 : index
    %c0_3 = arith.constant 0 : index
    %1 = vector.load %arg4[%c0_2, %c0_3] : memref<32x128xf32, #tpu.memory_space<vmem>>, vector<32x128xf32>
    %c0_4 = arith.constant 0 : index
    %c0_5 = arith.constant 0 : index
    %c0_6 = arith.constant 0 : index
    %2 = vector.load %arg1[%c0_4, %c0_5, %c0_6] : memref<4x16x96xf32, #tpu.memory_space<vmem>>, vector<4x16x8xf32>
    %c0_7 = arith.constant 0 : index
    %c0_8 = arith.constant 0 : index
    %c32 = arith.constant 32 : index
    %3 = vector.load %arg1[%c0_7, %c0_8, %c32] : memref<4x16x96xf32, #tpu.memory_space<vmem>>, vector<4x16x8xf32>
    %c0_9 = arith.constant 0 : index
    %c0_10 = arith.constant 0 : index
    %c64 = arith.constant 64 : index
    %4 = vector.load %arg1[%c0_9, %c0_10, %c64] : memref<4x16x96xf32, #tpu.memory_space<vmem>>, vector<4x16x8xf32>
    "tpu.trace_start"() <{level = 10 : i32, message = "bnd,bmd->bnm"}> : () -> ()
    %cst = arith.constant dense<0.000000e+00> : vector<4x16x16xf32>
    %5 = tpu.matmul %2, %3, %cst {dimension_numbers = #tpu.dot_dimension_numbers<[2], [2], [1], [1], [0, 0, 0, 1, 1, 1], [0], [0]>} : vector<4x16x8xf32>, vector<4x16x8xf32>, vector<4x16x16xf32> -> vector<4x16x16xf32>
    "tpu.trace_stop"() : () -> ()
    %cst_11 = arith.constant 0.353553385 : f32
    %6 = vector.broadcast %cst_11 : f32 to vector<4x16x16xf32>
    %7 = arith.mulf %5, %6 : vector<4x16x16xf32>
    %c0_12 = arith.constant 0 : index
    %c0_13 = arith.constant 0 : index
    %c0_14 = arith.constant 0 : index
    %8 = vector.load %arg2[%c0_12, %c0_13, %c0_14] : memref<4x16x16xf32, #tpu.memory_space<vmem>>, vector<1x16x16xf32>
    %9 = vector.shape_cast %8 : vector<1x16x16xf32> to vector<16x16xf32>
    %10 = vector.shape_cast %9 : vector<16x16xf32> to vector<1x16x16xf32>
    %11 = vector.broadcast %10 : vector<1x16x16xf32> to vector<4x16x16xf32>
    %12 = arith.addf %7, %11 : vector<4x16x16xf32>
    %13 = arith.addf %12, %0 : vector<4x16x16xf32>
    %cst_15 = arith.constant dense<0xFF800000> : vector<4x16xf32>
    %14 = vector.multi_reduction <maximumf>, %13, %cst_15 [2] : vector<4x16x16xf32> to vector<4x16xf32>
    %15 = vector.shape_cast %14 : vector<4x16xf32> to vector<4x16x1xf32>
    %16 = vector.broadcast %15 : vector<4x16x1xf32> to vector<4x16x16xf32>
    %17 = arith.subf %13, %16 : vector<4x16x16xf32>
    %18 = math.exp %17 : vector<4x16x16xf32>
    %cst_16 = arith.constant dense<0.000000e+00> : vector<4x16xf32>
    %19 = vector.multi_reduction <add>, %18, %cst_16 [2] : vector<4x16x16xf32> to vector<4x16xf32>
    %20 = vector.shape_cast %19 : vector<4x16xf32> to vector<4x16x1xf32>
    %21 = tpu.reciprocal %20 : vector<4x16x1xf32> -> vector<4x16x1xf32>
    %22 = vector.broadcast %21 : vector<4x16x1xf32> to vector<4x16x16xf32>
    %23 = arith.mulf %18, %22 : vector<4x16x16xf32>
    "tpu.trace_start"() <{level = 10 : i32, message = "bnm,bmd->bnd"}> : () -> ()
    %cst_17 = arith.constant dense<0.000000e+00> : vector<4x16x8xf32>
    %24 = tpu.matmul %23, %4, %cst_17 {dimension_numbers = #tpu.dot_dimension_numbers<[2], [1], [1], [2], [0, 0, 0, 1, 1, 2], [0], [0]>} : vector<4x16x16xf32>, vector<4x16x8xf32>, vector<4x16x8xf32> -> vector<4x16x8xf32>
    "tpu.trace_stop"() : () -> ()
    %c0_18 = arith.constant 0 : index
    %c0_19 = arith.constant 0 : index
    %c8 = arith.constant 8 : index
    %25 = vector.load %arg1[%c0_18, %c0_19, %c8] : memref<4x16x96xf32, #tpu.memory_space<vmem>>, vector<4x16x8xf32>
    %c0_20 = arith.constant 0 : index
    %c0_21 = arith.constant 0 : index
    %c40 = arith.constant 40 : index
    %26 = vector.load %arg1[%c0_20, %c0_21, %c40] : memref<4x16x96xf32, #tpu.memory_space<vmem>>, vector<4x16x8xf32>
    %c0_22 = arith.constant 0 : index
    %c0_23 = arith.constant 0 : index
    %c72 = arith.constant 72 : index
    %27 = vector.load %arg1[%c0_22, %c0_23, %c72] : memref<4x16x96xf32, #tpu.memory_space<vmem>>, vector<4x16x8xf32>
    "tpu.trace_start"() <{level = 10 : i32, message = "bnd,bmd->bnm"}> : () -> ()
    %cst_24 = arith.constant dense<0.000000e+00> : vector<4x16x16xf32>
    %28 = tpu.matmul %25, %26, %cst_24 {dimension_numbers = #tpu.dot_dimension_numbers<[2], [2], [1], [1], [0, 0, 0, 1, 1, 1], [0], [0]>} : vector<4x16x8xf32>, vector<4x16x8xf32>, vector<4x16x16xf32> -> vector<4x16x16xf32>
    "tpu.trace_stop"() : () -> ()
    %cst_25 = arith.constant 0.353553385 : f32
    %29 = vector.broadcast %cst_25 : f32 to vector<4x16x16xf32>
    %30 = arith.mulf %28, %29 : vector<4x16x16xf32>
    %c1 = arith.constant 1 : index
    %c0_26 = arith.constant 0 : index
    %c0_27 = arith.constant 0 : index
    %31 = vector.load %arg2[%c1, %c0_26, %c0_27] : memref<4x16x16xf32, #tpu.memory_space<vmem>>, vector<1x16x16xf32>
    %32 = vector.shape_cast %31 : vector<1x16x16xf32> to vector<16x16xf32>
    %33 = vector.shape_cast %32 : vector<16x16xf32> to vector<1x16x16xf32>
    %34 = vector.broadcast %33 : vector<1x16x16xf32> to vector<4x16x16xf32>
    %35 = arith.addf %30, %34 : vector<4x16x16xf32>
    %36 = arith.addf %35, %0 : vector<4x16x16xf32>
    %cst_28 = arith.constant dense<0xFF800000> : vector<4x16xf32>
    %37 = vector.multi_reduction <maximumf>, %36, %cst_28 [2] : vector<4x16x16xf32> to vector<4x16xf32>
    %38 = vector.shape_cast %37 : vector<4x16xf32> to vector<4x16x1xf32>
    %39 = vector.broadcast %38 : vector<4x16x1xf32> to vector<4x16x16xf32>
    %40 = arith.subf %36, %39 : vector<4x16x16xf32>
    %41 = math.exp %40 : vector<4x16x16xf32>
    %cst_29 = arith.constant dense<0.000000e+00> : vector<4x16xf32>
    %42 = vector.multi_reduction <add>, %41, %cst_29 [2] : vector<4x16x16xf32> to vector<4x16xf32>
    %43 = vector.shape_cast %42 : vector<4x16xf32> to vector<4x16x1xf32>
    %44 = tpu.reciprocal %43 : vector<4x16x1xf32> -> vector<4x16x1xf32>
    %45 = vector.broadcast %44 : vector<4x16x1xf32> to vector<4x16x16xf32>
    %46 = arith.mulf %41, %45 : vector<4x16x16xf32>
    "tpu.trace_start"() <{level = 10 : i32, message = "bnm,bmd->bnd"}> : () -> ()
    %cst_30 = arith.constant dense<0.000000e+00> : vector<4x16x8xf32>
    %47 = tpu.matmul %46, %27, %cst_30 {dimension_numbers = #tpu.dot_dimension_numbers<[2], [1], [1], [2], [0, 0, 0, 1, 1, 2], [0], [0]>} : vector<4x16x16xf32>, vector<4x16x8xf32>, vector<4x16x8xf32> -> vector<4x16x8xf32>
    "tpu.trace_stop"() : () -> ()
    %c0_31 = arith.constant 0 : index
    %c0_32 = arith.constant 0 : index
    %c16 = arith.constant 16 : index
    %48 = vector.load %arg1[%c0_31, %c0_32, %c16] : memref<4x16x96xf32, #tpu.memory_space<vmem>>, vector<4x16x8xf32>
    %c0_33 = arith.constant 0 : index
    %c0_34 = arith.constant 0 : index
    %c48 = arith.constant 48 : index
    %49 = vector.load %arg1[%c0_33, %c0_34, %c48] : memref<4x16x96xf32, #tpu.memory_space<vmem>>, vector<4x16x8xf32>
    %c0_35 = arith.constant 0 : index
    %c0_36 = arith.constant 0 : index
    %c80 = arith.constant 80 : index
    %50 = vector.load %arg1[%c0_35, %c0_36, %c80] : memref<4x16x96xf32, #tpu.memory_space<vmem>>, vector<4x16x8xf32>
    "tpu.trace_start"() <{level = 10 : i32, message = "bnd,bmd->bnm"}> : () -> ()
    %cst_37 = arith.constant dense<0.000000e+00> : vector<4x16x16xf32>
    %51 = tpu.matmul %48, %49, %cst_37 {dimension_numbers = #tpu.dot_dimension_numbers<[2], [2], [1], [1], [0, 0, 0, 1, 1, 1], [0], [0]>} : vector<4x16x8xf32>, vector<4x16x8xf32>, vector<4x16x16xf32> -> vector<4x16x16xf32>
    "tpu.trace_stop"() : () -> ()
    %cst_38 = arith.constant 0.353553385 : f32
    %52 = vector.broadcast %cst_38 : f32 to vector<4x16x16xf32>
    %53 = arith.mulf %51, %52 : vector<4x16x16xf32>
    %c2 = arith.constant 2 : index
    %c0_39 = arith.constant 0 : index
    %c0_40 = arith.constant 0 : index
    %54 = vector.load %arg2[%c2, %c0_39, %c0_40] : memref<4x16x16xf32, #tpu.memory_space<vmem>>, vector<1x16x16xf32>
    %55 = vector.shape_cast %54 : vector<1x16x16xf32> to vector<16x16xf32>
    %56 = vector.shape_cast %55 : vector<16x16xf32> to vector<1x16x16xf32>
    %57 = vector.broadcast %56 : vector<1x16x16xf32> to vector<4x16x16xf32>
    %58 = arith.addf %53, %57 : vector<4x16x16xf32>
    %59 = arith.addf %58, %0 : vector<4x16x16xf32>
    %cst_41 = arith.constant dense<0xFF800000> : vector<4x16xf32>
    %60 = vector.multi_reduction <maximumf>, %59, %cst_41 [2] : vector<4x16x16xf32> to vector<4x16xf32>
    %61 = vector.shape_cast %60 : vector<4x16xf32> to vector<4x16x1xf32>
    %62 = vector.broadcast %61 : vector<4x16x1xf32> to vector<4x16x16xf32>
    %63 = arith.subf %59, %62 : vector<4x16x16xf32>
    %64 = math.exp %63 : vector<4x16x16xf32>
    %cst_42 = arith.constant dense<0.000000e+00> : vector<4x16xf32>
    %65 = vector.multi_reduction <add>, %64, %cst_42 [2] : vector<4x16x16xf32> to vector<4x16xf32>
    %66 = vector.shape_cast %65 : vector<4x16xf32> to vector<4x16x1xf32>
    %67 = tpu.reciprocal %66 : vector<4x16x1xf32> -> vector<4x16x1xf32>
    %68 = vector.broadcast %67 : vector<4x16x1xf32> to vector<4x16x16xf32>
    %69 = arith.mulf %64, %68 : vector<4x16x16xf32>
    "tpu.trace_start"() <{level = 10 : i32, message = "bnm,bmd->bnd"}> : () -> ()
    %cst_43 = arith.constant dense<0.000000e+00> : vector<4x16x8xf32>
    %70 = tpu.matmul %69, %50, %cst_43 {dimension_numbers = #tpu.dot_dimension_numbers<[2], [1], [1], [2], [0, 0, 0, 1, 1, 2], [0], [0]>} : vector<4x16x16xf32>, vector<4x16x8xf32>, vector<4x16x8xf32> -> vector<4x16x8xf32>
    "tpu.trace_stop"() : () -> ()
    %c0_44 = arith.constant 0 : index
    %c0_45 = arith.constant 0 : index
    %c24 = arith.constant 24 : index
    %71 = vector.load %arg1[%c0_44, %c0_45, %c24] : memref<4x16x96xf32, #tpu.memory_space<vmem>>, vector<4x16x8xf32>
    %c0_46 = arith.constant 0 : index
    %c0_47 = arith.constant 0 : index
    %c56 = arith.constant 56 : index
    %72 = vector.load %arg1[%c0_46, %c0_47, %c56] : memref<4x16x96xf32, #tpu.memory_space<vmem>>, vector<4x16x8xf32>
    %c0_48 = arith.constant 0 : index
    %c0_49 = arith.constant 0 : index
    %c88 = arith.constant 88 : index
    %73 = vector.load %arg1[%c0_48, %c0_49, %c88] : memref<4x16x96xf32, #tpu.memory_space<vmem>>, vector<4x16x8xf32>
    "tpu.trace_start"() <{level = 10 : i32, message = "bnd,bmd->bnm"}> : () -> ()
    %cst_50 = arith.constant dense<0.000000e+00> : vector<4x16x16xf32>
    %74 = tpu.matmul %71, %72, %cst_50 {dimension_numbers = #tpu.dot_dimension_numbers<[2], [2], [1], [1], [0, 0, 0, 1, 1, 1], [0], [0]>} : vector<4x16x8xf32>, vector<4x16x8xf32>, vector<4x16x16xf32> -> vector<4x16x16xf32>
    "tpu.trace_stop"() : () -> ()
    %cst_51 = arith.constant 0.353553385 : f32
    %75 = vector.broadcast %cst_51 : f32 to vector<4x16x16xf32>
    %76 = arith.mulf %74, %75 : vector<4x16x16xf32>
    %c3 = arith.constant 3 : index
    %c0_52 = arith.constant 0 : index
    %c0_53 = arith.constant 0 : index
    %77 = vector.load %arg2[%c3, %c0_52, %c0_53] : memref<4x16x16xf32, #tpu.memory_space<vmem>>, vector<1x16x16xf32>
    %78 = vector.shape_cast %77 : vector<1x16x16xf32> to vector<16x16xf32>
    %79 = vector.shape_cast %78 : vector<16x16xf32> to vector<1x16x16xf32>
    %80 = vector.broadcast %79 : vector<1x16x16xf32> to vector<4x16x16xf32>
    %81 = arith.addf %76, %80 : vector<4x16x16xf32>
    %82 = arith.addf %81, %0 : vector<4x16x16xf32>
    %cst_54 = arith.constant dense<0xFF800000> : vector<4x16xf32>
    %83 = vector.multi_reduction <maximumf>, %82, %cst_54 [2] : vector<4x16x16xf32> to vector<4x16xf32>
    %84 = vector.shape_cast %83 : vector<4x16xf32> to vector<4x16x1xf32>
    %85 = vector.broadcast %84 : vector<4x16x1xf32> to vector<4x16x16xf32>
    %86 = arith.subf %82, %85 : vector<4x16x16xf32>
    %87 = math.exp %86 : vector<4x16x16xf32>
    %cst_55 = arith.constant dense<0.000000e+00> : vector<4x16xf32>
    %88 = vector.multi_reduction <add>, %87, %cst_55 [2] : vector<4x16x16xf32> to vector<4x16xf32>
    %89 = vector.shape_cast %88 : vector<4x16xf32> to vector<4x16x1xf32>
    %90 = tpu.reciprocal %89 : vector<4x16x1xf32> -> vector<4x16x1xf32>
    %91 = vector.broadcast %90 : vector<4x16x1xf32> to vector<4x16x16xf32>
    %92 = arith.mulf %87, %91 : vector<4x16x16xf32>
    "tpu.trace_start"() <{level = 10 : i32, message = "bnm,bmd->bnd"}> : () -> ()
    %cst_56 = arith.constant dense<0.000000e+00> : vector<4x16x8xf32>
    %93 = tpu.matmul %92, %73, %cst_56 {dimension_numbers = #tpu.dot_dimension_numbers<[2], [1], [1], [2], [0, 0, 0, 1, 1, 2], [0], [0]>} : vector<4x16x16xf32>, vector<4x16x8xf32>, vector<4x16x8xf32> -> vector<4x16x8xf32>
    "tpu.trace_stop"() : () -> ()
    %94 = tpu.concatenate %24, %47, %70, %93 in 2 : vector<4x16x8xf32>, vector<4x16x8xf32>, vector<4x16x8xf32>, vector<4x16x8xf32> -> vector<4x16x32xf32>
    %95 = vector.shape_cast %94 : vector<4x16x32xf32> to vector<64x32xf32>
    %cst_57 = arith.constant dense<0.000000e+00> : vector<64x128xf32>
    %96 = tpu.matmul %95, %1, %cst_57 {dimension_numbers = #tpu.dot_dimension_numbers<[1], [0], [0], [1], [0, 0, 1, 1], [], []>} : vector<64x32xf32>, vector<32x128xf32>, vector<64x128xf32> -> vector<64x128xf32>
    %c0_58 = arith.constant 0 : index
    %c0_59 = arith.constant 0 : index
    %97 = vector.load %arg5[%c0_58, %c0_59] : memref<1x128xf32, #tpu.memory_space<vmem>>, vector<1x128xf32>
    %98 = vector.broadcast %97 : vector<1x128xf32> to vector<64x128xf32>
    %99 = arith.addf %96, %98 : vector<64x128xf32>
    %100 = vector.shape_cast %99 : vector<64x128xf32> to vector<4x16x128xf32>
    %c0_60 = arith.constant 0 : index
    %c0_61 = arith.constant 0 : index
    %c0_62 = arith.constant 0 : index
    %101 = vector.load %arg6[%c0_60, %c0_61, %c0_62] : memref<4x16x128xf32, #tpu.memory_space<vmem>>, vector<4x16x128xf32>
    tpu.vector_store %arg6[%c0_60, %c0_61, %c0_62], %100 {strides = array<i32>} : memref<4x16x128xf32, #tpu.memory_space<vmem>>, vector<4x16x128xf32>,
    return
  }
  func.func @transform_0(%arg0: i32) -> (i32, i32, i32) {
    %c0_i32 = arith.constant 0 : i32
    %c0_i32_0 = arith.constant 0 : i32
    %c0_i32_1 = arith.constant 0 : i32
    return %arg0, %c0_i32, %c0_i32_0 : i32, i32, i32
  }
  func.func @transform_1(%arg0: i32) -> (i32, i32, i32) {
    %c0_i32 = arith.constant 0 : i32
    %c0_i32_0 = arith.constant 0 : i32
    %c0_i32_1 = arith.constant 0 : i32
    %c0_i32_2 = arith.constant 0 : i32
    return %c0_i32, %c0_i32_0, %c0_i32_1 : i32, i32, i32
  }
  func.func @transform_2(%arg0: i32) -> (i32, i32, i32) {
    %c0_i32 = arith.constant 0 : i32
    %c0_i32_0 = arith.constant 0 : i32
    %c0_i32_1 = arith.constant 0 : i32
    %c0_i32_2 = arith.constant 0 : i32
    return %c0_i32, %c0_i32_0, %c0_i32_1 : i32, i32, i32
  }
  func.func @transform_3(%arg0: i32) -> (i32, i32) {
    %c0_i32 = arith.constant 0 : i32
    %c0_i32_0 = arith.constant 0 : i32
    %c0_i32_1 = arith.constant 0 : i32
    return %c0_i32, %c0_i32_0 : i32, i32
  }
  func.func @transform_4(%arg0: i32) -> (i32, i32) {
    %c0_i32 = arith.constant 0 : i32
    %c0_i32_0 = arith.constant 0 : i32
    %c0_i32_1 = arith.constant 0 : i32
    return %c0_i32, %c0_i32_0 : i32, i32
  }
  func.func @transform_5(%arg0: i32) -> (i32, i32, i32) {
    %c0_i32 = arith.constant 0 : i32
    %c0_i32_0 = arith.constant 0 : i32
    %c0_i32_1 = arith.constant 0 : i32
    return %arg0, %c0_i32, %c0_i32_0 : i32, i32, i32
  }
}

</mosaic_0001>

<bundles_post_ra>
// kernel: tpu_custom_call.1
= control target key start
LH: loop header
LB: loop body
LE: loop exit
PB: predicated region body
PF: predicated region fallthrough
CT: control target
= control target key end

     0   :  { %10 = vsyncpa [#allocation3], 0  ;;  %s4480_s0 = inlined_call_operand.hbm [shape: f32[8,16,96], index: 0, kind: input, shape index: {}]   ;;  %s4481_s1 = inlined_call_operand.hbm [shape: f32[4,16,16], index: 1, kind: input, shape index: {}]   ;;  %s4482_s2 = inlined_call_operand.hbm [shape: f32[4,16,16], index: 2, kind: input, shape index: {}]   ;;  %s4483_s3 = inlined_call_operand.hbm [shape: f32[32,128], index: 3, kind: input, shape index: {}]   ;;  %s4484_s4 = inlined_call_operand.vmem [shape: f32[1,128], index: 4, kind: input, shape index: {}]   ;;  %s4485_s5 = inlined_call_operand.hbm [shape: f32[8,16,128], index: 5, kind: output, shape index: {}]  }
   0x1   :  { %12 = vsyncpa [#allocation3 + $0x1], 0 }
   0x2   :  { %13 = vsyncpa [#allocation6], 0 }
   0x3   :  { %14 = vsyncpa [#allocation9], 0 }
   0x4   :  { %15 = vsyncpa [#allocation4], 0 }
   0x5   :  { %17 = vsyncpa [#allocation4 + $0x1], 0  ;;  %s3436_s18 = smov 0   ;;  %s3438_s19 = smov 0  }
   0x6   :  { %s3440_s20 = smov 0   ;;  %s3442_s21 = smov 0  }
   0x7 LB: > { %s3457_s22 = sadd.s32 4294967295, %s3384_s21   ;;  %s2737_s23 = sadd.s32 4294967294, %s3384_s21   ;;  %s3384_s21 = sphi %s3442_s21, %s4500_s21   ;;  %s3380_s20 = sphi %s3440_s20, %s4499_s20   ;;  %s3376_s19 = sphi %s3438_s19, %s4498_s19   ;;  %s3372_s18 = sphi %s3436_s18, %s4497_s18  }
   0x8   : > { %p43_p0 = scmp.ne.s32.totalorder %s3376_s19, %s3372_s18  ;;  %p44_p1 = scmp.eq.s32.totalorder %s3457_s22, 0 }
   0x9   : > { %p151_p2 = scmp.eq.s32.totalorder %s3457_s22, 1  ;;  %p157_p3 = scmp.eq.s32.totalorder %s2737_s23, 1 }
   0xa   : > { %p3466_p4 = por %p44_p1, %p43_p0  ;;  %p2738_p5 = scmp.ge.s32.totalorder %s3384_s21, 1 }
   0xb   : > { %p3471_p6 = por %p157_p3, %p43_p0  ;;  %p164_p7 = scmp.lt.s32.totalorder %s3384_s21, 3 }
   0xc   : > { %s175_s28 = sshll.u32 %s4481_s1, 4  ;;  %s3386_s30 = smov [#allocation5]   ;;  %s176_s28 = int_to_ptr.hbm [resolvable:$true] %s175_s28 }
   0xd   : > { %p3479_p8 = pnand %p2738_p5, %p164_p7  ;;  %s177_s6 = sshll.u32 %s3386_s30, 4  ;;  %s178_s6 = int_to_ptr.vmem [resolvable:$true] %s177_s6 }
   0xe   : > { %s189_s10 = sshll.u32 %s4482_s2, 4  ;;  %s4486_s11 = smov 128   ;;  %s190_s10 = int_to_ptr.hbm [resolvable:$true] %s189_s10 }
   0xf   : > { %p2889_p9 = pneg %p3479_p8  ;;  %s3388_s12 = smov 8  }
  0x10   : > { %s3389_s13 = smov [#allocation7]   ;;  %s203_s17 = sshll.u32 %s4483_s3, 4  ;;  %s204_s17 = int_to_ptr.hbm [resolvable:$true] %s203_s17 }
  0x11   : > { %p3487_p10 = pnand %p2889_p9, %p44_p1  ;;  %s191_s14 = sshll.u32 %s3389_s13, 4  ;;  %s192_s14 = int_to_ptr.vmem [resolvable:$true] %s191_s14 }
  0x12   : > { %s3390_s23 = smov [#allocation8]   ;;  %s3509_s27 = sadd.s32 1, %s3384_s21  }
  0x13   : > { %2892 = dma.hbm_to_vmem [thread:$0]  (!%p3487_p10), %s176_s28, 1024, %s178_s6, [#allocation6], %s4486_s11, %s4486_s11, %s3388_s12  }
  0x14   : > { %2895 = dma.hbm_to_vmem [thread:$0]  (!%p3487_p10), %s190_s10, 1024, %s192_s14, [#allocation6], %s4486_s11, %s4486_s11, %s3388_s12  }
  0x15   : > { %s205_s26 = sshll.u32 %s3390_s23, 4  ;;  %s27_s28 = ssub.s32 %s3384_s21, %s3509_s27  ;;  %s206_s26 = int_to_ptr.vmem [resolvable:$true] %s205_s26 }
  0x16   : > { %2898 = dma.hbm_to_vmem [thread:$0]  (!%p3487_p10), %s204_s17, 512, %s206_s26, [#allocation9], %s4486_s11, %s4486_s11, %s3388_s12  }
  0x17   : > { %s30_s30 = sadd.s32 1, %s3380_s20  ;;  %p28_p12 = scmp.eq.s32.totalorder %s27_s28, 0 }
  0x18   : > { %p37_p13 = scmp.ne.s32.totalorder %s3380_s20, %s3376_s19  ;;  %p38_p0 = scmp.eq.s32.totalorder %s3384_s21, 0 }
  0x19   : > { %s3523_s6 = scalar_select %p28_p12, %s3380_s20, %s30_s30  }
  0x1a   : > { %p3527_p3 = por %p151_p2, %p37_p13  ;;  %p2910_p5 = scmp.lt.s32.totalorder %s3384_s21, 2 }
  0x1b   : > { %s222_s9 = sand.u32 1, %s3380_s20   ;;  %s2864_s7 = sshll.u32 %s3384_s21, 6 }
  0x1c   : > { %p39_p7 = por %p38_p0, %p37_p13  ;;  %s2743_s10 = sshll.u32 %s222_s9, 6 }
  0x1d   : > { %s232_s15 = scalar_lea.hbm %s4480_s0, %s2864_s7  ;;  %s226_s17 = scalar_lea.vmem [#allocation2], %s2743_s10 }
  0x1e   : > { %s233_s16 = sshll.u32 %s232_s15, 4  ;;  %s235_s23 = sshll.u32 %s226_s17, 4  ;;  %s234_s16 = int_to_ptr.hbm [resolvable:$true] %s233_s16  ;;  %s236_s23 = int_to_ptr.vmem [resolvable:$true] %s235_s23 }
  0x1f   : > { %p3537_p9 = pnand %p2910_p5, %p39_p7  ;;  %s223_s28 = scalar_lea.sflag [#allocation3], %s222_s9 }
  0x20   : > { %s3280_s30 = sshra.s32 %s234_s16, 4  ;;  %s3287_s10 = scalar_lea.hbm %s4480_s0, 128  ;;  %s3281_s30 = int_to_ptr.hbm [resolvable:$true] %s3280_s30 }
  0x21   : > { %s3282_s11 = scalar_lea.hbm %s3281_s30, 64  ;;  %p3284_p10 = pneg %p3537_p9 }
  0x22   : > { %p3283_p2 = scmp.ne.s32.totalorder %s3281_s30, %s3282_s11  ;;  %p3288_p0 = scmp.lt.s32.totalorder %s3281_s30, %s4480_s0 }
  0x23   : > { %p3289_p5 = scmp.lt.s32.totalorder %s3287_s10, %s3282_s11 }
  0x24   : > { %p3285_p12 = pnand %p3284_p10, %p3283_p2 }
  0x25   : > { %p3290_p7 = por %p3289_p5, %p3288_p0 }
  0x26   : > { %p3286_p13 = pneg %p3285_p12 }
  0x28   : > { %p3291_p11 = pnand %p3290_p7, %p3286_p13 }
  0x2a   : > { %3294 = shalt.err (!%p3291_p11)
}
  0x2b   : > { %s4493_s9 = smov 128   ;;  %247 = sbr.rel (%p3479_p8) target bundleno = 2485 (0x9b5), region = 40 }
  0x2c   : > { %2902 = dma.hbm_to_vmem [thread:$0]  (!%p3537_p9), %s234_s16, 1024, %s236_s23, %s223_s28, %s4493_s9, %s4493_s9, %s3388_s12  }
  0x2d   : > { %s3557_s17 = sand.u32 (!%p3479_p8), 1, %s3376_s19  }
  0x2e   : > { %s2748_s11 = sshll.u32 (!%p3479_p8), %s3557_s17, 6  ;;  %s250_s30 = scalar_lea.sflag (!%p3479_p8), [#allocation3], %s3557_s17 }
  0x2f   : > { %s3563_s7 = scalar_lea.vmem (!%p3479_p8), [#allocation2], %s2748_s11 }
  0x30   : > { %3355 = dma.done.wait (%p3466_p4), %s250_s30, 1024  }
  0x31   : > { %3357 = vsyncadd (%p3466_p4), %s250_s30, 4294966272 }
  0x32   : > { %3359 = dma.done.wait (%p44_p1), [#allocation6], 2048  }
  0x33   : > { %3361 = vsyncadd (%p44_p1), [#allocation6], 4294965248 }
  0x34   : > { %3363 = dma.done.wait (%p44_p1), [#allocation9], 512  }
  0x35   : > { %3365 = vsyncadd (%p44_p1), [#allocation9], 4294966784  ;;  %v3578_v0 = vld [vmem:[%s3563_s7 + $0x28] sm:$0xff]  ;;  %s3391_s24 = smov 96   ;;  %v3586_v2 = vld [vmem:[%s3563_s7 + $0x38] sm:$0xff]  ;;  %s3392_s29 = smov 88  }
  0x36   : > { %v3581_v1 = vld [vmem:[%s3563_s7 + $0x8] sm:$0xff]  ;;  %397 = vrot.lane.b32.xlu1 %v3578_v0, %s3391_s24  ;;  %434 = vrot.lane.b32.xlu2 %v3586_v2, %s3391_s24  ;;  %v3590_v3 = vld [vmem:[%s3563_s7 + $0x20] sm:$0xff]  ;;  %vm324_vm0 = vcmask 64512   ;;  %s3393_s12 = smov 64   ;;  %vm493_vm1 = vcmask 130048   ;;  %v3667_v56 = vld [vmem:[#allocation7 + $0x10] sm:$0xff] }
  0x37   : > { %322 = vrot.lane.b32.xlu0 %v3581_v1, %s3391_s24  ;;  %v3593_v4 = vld [vmem:[%s3563_s7] sm:$0xff]  ;;  %v3596_v5 = vld [vmem:[%s3563_s7 + $0x30] sm:$0xff]  ;;  %v3602_v6 = vld [vmem:[%s3563_s7 + $0x18] sm:$0xff]  ;;  %v3617_v12 = vpack.i.bf16 %v3590_v3, %v3578_v0  ;;  %s3394_s16 = smov 120   ;;  %s3395_s23 = smov 56  }
  0x38   : > { %v3605_v7 = vld [vmem:[%s3563_s7 + $0x10] sm:$0xff]  ;;  %v2967_v11 = vpack.i.bf16 %v3593_v4, %v3581_v1  ;;  %v2977_v15 = vpack.i.bf16 %v3596_v5, %v3586_v2  ;;  %v475_v20 = vld [vmem:[#allocation5] sm:$0xff]  ;;  %v476_v33 = vld [vmem:[#allocation5 + $0x8] sm:$0xff]  ;;  %s3396_s26 = smov 80   ;;  %s3397_s28 = smov 112  }
  0x39   : > { %v3647_v22 = vld [vmem:[#allocation7] sm:$0xff]  ;;  %v3656_v38 = vld [vmem:[#allocation7 + $0x8] sm:$0xff]  ;;  %v3674_v62 = vld [vmem:[#allocation7 + $0x30] sm:$0xff]  ;;  %s3398_s13 = smov 48   ;;  %s3399_s10 = smov 72  }
  0x3a   : > { %v3654_v34 = vld [vmem:[#allocation7 + $0x20] sm:$0xff]  ;;  %v3662_v49 = vld [vmem:[#allocation7 + $0x28] sm:$0xff]  ;;  %s3400_s14 = smov 104   ;;  %s3401_s15 = smov 40  }
  0x3b   : > { %s3402_s9 = smov 8   ;;  %s3403_s30 = smov 16  }
  0x3e   : > { %395 = vrot.lane.b32.xlu1 %v3590_v3, %s3391_s24  ;;  %432 = vrot.lane.b32.xlu2 %v3596_v5, %s3391_s24 }
  0x3f   : > { %320 = vrot.lane.b32.xlu0 %v3593_v4, %s3391_s24 }
  0x46   : > { %358 = vrot.lane.b32.xlu1 %v3605_v7, %s3391_s24  ;;  %2973 = vrot.lane.b32.xlu2 %v3617_v12, %s3393_s12 }
  0x47   : > { %360 = vrot.lane.b32.xlu0 %v3602_v6, %s3391_s24 }
  0x4e   : > { %924 = vrot.lane.b32.xlu1 %v3578_v0, %s3392_s29  ;;  %2978 = vrot.lane.b32.xlu2 %v2977_v15, %s3393_s12 }
  0x4f   : > { %2968 = vrot.lane.b32.xlu0 %v2967_v11, %s3393_s12 }
  0x90   : > { %v435_v10 = vpop.permute.xlu2 %434 }
  0x98   : > { %v433_v16 = vpop.permute.xlu2 %432 }
  0xa0   : > { %v2974_v31 = vpop.permute.xlu2 %2973 }
  0xa1   : > { %v2975_v35 = vunpack.i.l.bf16 %v2974_v31  ;;  %v2976_v39 = vunpack.i.h.bf16 %v2974_v31 }
  0xa8   : > { %v398_v8 = vpop.permute.xlu1 %397  ;;  %v2979_v47 = vpop.permute.xlu2 %2978 }
  0xa9   : > { %v323_v9 = vpop.permute.xlu0 %322  ;;  %2761 = vmatpush.xpose.msk.msra.mxu3 %vm324_vm0, %v398_v8  ;;  %v2981_v50 = vunpack.i.h.bf16 %v2979_v47  ;;  %v2980_v51 = vunpack.i.l.bf16 %v2979_v47 }
  0xaa   : > { %2753 = vmatpush.xpose.msk.msra.mxu1 %vm324_vm0, %v323_v9  ;;  %v3676_v9 = vld [vmem:[#allocation7 + $0x18] sm:$0xff] }
  0xb0   : > { %v396_v13 = vpop.permute.xlu1 %395 }
  0xb1   : > { %v321_v14 = vpop.permute.xlu0 %320  ;;  %2762 = vmatpush.xpose.msk.msra.mxu3 %vm324_vm0, %v396_v13 }
  0xb2   : > { %2754 = vmatpush.xpose.msk.msra.mxu1 %vm324_vm0, %v321_v14 }
  0xb4   : > { %2763 = vmatmul.msk.f32.vlgmr.msra.gmra.mxu3 %vm324_vm0, %v3590_v3 }
  0xb5   : > { %2765 = vmatpush.xpose.msk.msrb.mxu3 %vm324_vm0, %v435_v10  ;;  %2755 = vmatmul.msk.f32.vlgmr.msra.gmra.mxu1 %vm324_vm0, %v3593_v4 }
  0xb8   : > { %v359_v18 = vpop.permute.xlu1 %358 }
  0xb9   : > { %2766 = vmatpush.xpose.msk.msrb.mxu3 %vm324_vm0, %v433_v16  ;;  %v361_v17 = vpop.permute.xlu0 %360 }
  0xba   : > { %2757 = vmatpush.xpose.msk.msrb.mxu1 %vm324_vm0, %v361_v17 }
  0xbc   : > { %2764 = vmatmul.msk.f32.gmra.mxu3 %vm324_vm0, %v3578_v0 }
  0xbd   : > { %2756 = vmatmul.msk.f32.gmra.mxu1 %vm324_vm0, %v3581_v1  ;;  %817 = vmatpush.msra.mxu3 %v2980_v51 }
  0xbe   : > { %2758 = vmatpush.xpose.msk.msrb.mxu1 %vm324_vm0, %v359_v18 }
  0xbf   : > { %818 = vmatpush.msra.mxu3 %v2981_v50 }
  0xc1   : > { %v2969_v26 = vpop.permute.xlu0 %2968 }
  0xc2   : > { %v2970_v29 = vunpack.i.l.bf16 %v2969_v26  ;;  %v2971_v30 = vunpack.i.h.bf16 %v2969_v26 }
  0xc4   : > { %2767 = vmatmul.msk.f32.vlgmr.msrb.gmra.mxu3 %vm324_vm0, %v3596_v5  ;;  %712 = vmatpush.msra.mxu0 %v2970_v29 }
  0xc5   : > { %2759 = vmatmul.msk.f32.vlgmr.msrb.gmra.mxu1 %vm324_vm0, %v3605_v7  ;;  %2867 = vmatpush.msra.mxu2 %v2970_v29 }
  0xc6   : > { %713 = vmatpush.msra.mxu0 %v2971_v30 }
  0xc7   : > { %2868 = vmatpush.msra.mxu2 %v2971_v30 }
  0xc9   : > { %782 = vmatpush.msrb.mxu2 %v2975_v35 }
  0xcb   : > { %783 = vmatpush.msrb.mxu2 %v2976_v39 }
  0xcc   : > { %2768 = vmatmul.msk.f32.gmra.mxu3 %vm324_vm0, %v3586_v2 }
  0xcd   : > { %2760 = vmatmul.msk.f32.gmra.mxu1 %vm324_vm0, %v3602_v6 }
 0x132   : > { %v350_v19 = vpop.f32.mrf.mxu1 }
 0x133   : > { %v467_v21 = vmul.f32 0.35355338, %v350_v19  ;;  %v3687_v19 = vld [vmem:[#allocation7 + $0x38] sm:$0xff] }
 0x135   : > { %v477_v23 = vadd.f32 %v475_v20, %v467_v21 }
 0x137   : > { %v3650_v24 = vadd.f32 %v477_v23, %v3647_v22  ;;  %v424_v25 = vpop.f32.mrf.mxu3 }
 0x138   : > { %v471_v27 = vmul.f32 0.35355338, %v424_v25 }
 0x139   : > { %v494_v28 = vsel %vm493_vm1, %v3650_v24, -inf }
 0x13a   : > { %v353_v32 = vpop.f32.mrf.mxu1  ;;  %495 = vmax.xlane.f32.xlu0 %v494_v28  ;;  %v481_v36 = vadd.f32 %v475_v20, %v471_v27 }
 0x13b   : > { %v468_v37 = vmul.f32 0.35355338, %v353_v32 }
 0x13c   : > { %v489_v41 = vadd.f32 %v481_v36, %v3654_v34 }
 0x13d   : > { %v478_v40 = vadd.f32 %v476_v33, %v468_v37 }
 0x13e   : > { %v506_v43 = vsel %vm493_vm1, %v489_v41, -inf }
 0x13f   : > { %v486_v42 = vadd.f32 %v478_v40, %v3656_v38  ;;  %v427_v44 = vpop.f32.mrf.mxu3 }
 0x140   : > { %v472_v45 = vmul.f32 0.35355338, %v427_v44 }
 0x141   : > { %v497_v46 = vsel %vm493_vm1, %v486_v42, -inf }
 0x142   : > { %v387_v48 = vpop.f32.mrf.mxu1  ;;  %498 = vmax.xlane.f32.xlu2 %v497_v46  ;;  %507 = vmax.xlane.f32.xlu0 %v506_v43  ;;  %v482_v52 = vadd.f32 %v476_v33, %v472_v45 }
 0x143   : > { %v469_v53 = vmul.f32 0.35355338, %v387_v48 }
 0x144   : > { %v3665_v55 = vadd.f32 %v482_v52, %v3662_v49 }
 0x145   : > { %v479_v54 = vadd.f32 %v475_v20, %v469_v53 }
 0x146   : > { %v509_v57 = vsel %vm493_vm1, %v3665_v55, -inf }
 0x147   : > { %v461_v58 = vpop.f32.mrf.mxu3  ;;  %510 = vmax.xlane.f32.xlu1 %v509_v57  ;;  %v3672_v60 = vadd.f32 %v479_v54, %v3667_v56 }
 0x148   : > { %v473_v59 = vmul.f32 0.35355338, %v461_v58 }
 0x149   : > { %v500_v11 = vsel %vm493_vm1, %v3672_v60, -inf }
 0x14a   : > { %v390_v61 = vpop.f32.mrf.mxu1  ;;  %v483_v63 = vadd.f32 %v475_v20, %v473_v59 }
 0x14b   : > { %v470_v8 = vmul.f32 0.35355338, %v390_v61 }
 0x14c   : > { %v3681_v13 = vadd.f32 %v483_v63, %v3674_v62 }
 0x14d   : > { %v480_v10 = vadd.f32 %v476_v33, %v470_v8 }
 0x14e   : > { %v512_v14 = vsel %vm493_vm1, %v3681_v13, -inf }
 0x14f   : > { %v488_v15 = vadd.f32 %v480_v10, %v3676_v9  ;;  %v464_v16 = vpop.f32.mrf.mxu3  ;;  %501 = vmax.xlane.f32.xlu1 %v500_v11  ;;  %513 = vmax.xlane.f32.xlu2 %v512_v14 }
 0x150   : > { %v474_v17 = vmul.f32 0.35355338, %v464_v16 }
 0x151   : > { %v503_v18 = vsel %vm493_vm1, %v488_v15, -inf }
 0x152   : > { %504 = vmax.xlane.f32.xlu0 %v503_v18  ;;  %v484_v20 = vadd.f32 %v476_v33, %v474_v17 }
 0x154   : > { %v3690_v21 = vadd.f32 %v484_v20, %v3687_v19 }
 0x156   : > { %v515_v23 = vsel %vm493_vm1, %v3690_v21, -inf }
 0x157   : > { %516 = vmax.xlane.f32.xlu2 %v515_v23 }
 0x1ad   : > { %v496_v25 = vpop.xlane.xlu0 %495 }
 0x1ae   : > { %v518_v26 = vsub.f32 %v3650_v24, %v496_v25 }
 0x1b0   : > { %v526_v27 = vmul.f32 1.442695, %v518_v26 }
 0x1b2   : > { %3048 = vpow2.f32 %v526_v27 }
 0x1b5   : > { %v499_v28 = vpop.xlane.xlu2 %498  ;;  %v508_v29 = vpop.xlane.xlu0 %507 }
 0x1b6   : > { %v519_v30 = vsub.f32 %v486_v42, %v499_v28  ;;  %v522_v31 = vsub.f32 %v489_v41, %v508_v29  ;;  %v3715_v41 = vpop.permute.xlu1 %924 }
 0x1b8   : > { %v3695_v32 = vpop.eup %3048  ;;  %v528_v35 = vmul.f32 1.442695, %v519_v30  ;;  %v534_v33 = vmul.f32 1.442695, %v522_v31 }
 0x1b9   : > { %v542_v36 = vsel %vm493_vm1, %v3695_v32, 0.0 }
 0x1ba   : > { %3050 = vpow2.f32 %v528_v35  ;;  %543 = vadd.xlane.f32.xlu0 %v542_v36 }
 0x1bb   : > { %3052 = vpow2.f32 %v534_v33 }
 0x1be   : > { %v511_v43 = vpop.xlane.xlu1 %510 }
 0x1bf   : > { %v523_v45 = vsub.f32 %v3665_v55, %v511_v43  ;;  %v3735_v55 = vpack.i.bf16 %v3605_v7, %v3602_v6 }
 0x1c0   : > { %v3699_v37 = vpop.eup %3050 }
 0x1c1   : > { %v3701_v39 = vpop.eup %3052  ;;  %v545_v24 = vsel %vm493_vm1, %v3699_v37, 0.0  ;;  %v536_v47 = vmul.f32 1.442695, %v523_v45 }
 0x1c2   : > { %546 = vadd.xlane.f32.xlu2 %v545_v24  ;;  %v554_v40 = vsel %vm493_vm1, %v3701_v39, 0.0 }
 0x1c3   : > { %555 = vadd.xlane.f32.xlu1 %v554_v40 }
 0x1c5   : > { %v505_v42 = vpop.xlane.xlu0 %504 }
 0x1c6   : > { %v521_v44 = vsub.f32 %v488_v15, %v505_v42  ;;  %v502_v48 = vpop.xlane.xlu1 %501 }
 0x1c7   : > { %v520_v50 = vsub.f32 %v3672_v60, %v502_v48  ;;  %v514_v60 = vpop.xlane.xlu2 %513 }
 0x1c8   : > { %v532_v46 = vmul.f32 1.442695, %v521_v44  ;;  %v524_v61 = vsub.f32 %v3681_v13, %v514_v60 }
 0x1c9   : > { %v530_v52 = vmul.f32 1.442695, %v520_v50 }
 0x1ca   : > { %3054 = vpow2.f32 %v532_v46  ;;  %v538_v63 = vmul.f32 1.442695, %v524_v61 }
 0x1cb   : > { %3056 = vpow2.f32 %v536_v47 }
 0x1cc   : > { %3058 = vpow2.f32 %v530_v52 }
 0x1cd   : > { %3060 = vpow2.f32 %v538_v63 }
 0x1ce   : > { %842 = vrot.lane.b32.xlu0 %v3581_v1, %s3392_s29 }
 0x1cf   : > { %v517_v8 = vpop.xlane.xlu2 %516 }
 0x1d0   : > { %v3725_v51 = vpop.eup %3054  ;;  %v525_v10 = vsub.f32 %v3690_v21, %v517_v8 }
 0x1d1   : > { %v3729_v53 = vpop.eup %3056  ;;  %v551_v54 = vsel %vm493_vm1, %v3725_v51, 0.0 }
 0x1d2   : > { %v557_v57 = vsel %vm493_vm1, %v3729_v53, 0.0  ;;  %v3741_v58 = vpop.eup %3058  ;;  %v540_v14 = vmul.f32 1.442695, %v525_v10 }
 0x1d3   : > { %v548_v59 = vsel %vm493_vm1, %v3741_v58, 0.0  ;;  %v3757_v15 = vpop.eup %3060 }
 0x1d4   : > { %v560_v13 = vsel %vm493_vm1, %v3757_v15, 0.0 }
 0x1d6   : > { %961 = vrot.lane.b32.xlu0 %v3586_v2, %s3394_s16 }
 0x1da   : > { %922 = vrot.lane.b32.xlu2 %v3590_v3, %s3392_s29 }
 0x1dc   : > { %918 = vrot.lane.b32.xlu1 %v3590_v3, %s3394_s16 }
 0x1e4   : > { %920 = vrot.lane.b32.xlu1 %v3578_v0, %s3394_s16 }
 0x1ec   : > { %965 = vrot.lane.b32.xlu1 %v3586_v2, %s3392_s29 }
 0x1f4   : > { %963 = vrot.lane.b32.xlu1 %v3596_v5, %s3392_s29 }
 0x1fc   : > { %959 = vrot.lane.b32.xlu1 %v3596_v5, %s3394_s16 }
 0x200   : > { %552 = vadd.xlane.f32.xlu0 %v551_v54 }
 0x203   : > { %558 = vadd.xlane.f32.xlu2 %v557_v57 }
 0x204   : > { %2983 = vrot.lane.b32.xlu1 %v3735_v55, %s3393_s12  ;;  %s295_s12 = scalar_lea.vmem [#allocation10], %s2748_s11  ;;  %s2866_s11 = sshll.u32 %s3457_s22, 6 }
 0x20b   : > { %549 = vadd.xlane.f32.xlu2 %v548_v59 }
 0x20c   : > { %836 = vrot.lane.b32.xlu1 %v3593_v4, %s3394_s16 }
 0x214   : > { %883 = vrot.lane.b32.xlu0 %v3602_v6, %s3392_s29 }
 0x21c   : > { %877 = vrot.lane.b32.xlu0 %v3605_v7, %s3394_s16 }
 0x223   : > { %840 = vrot.lane.b32.xlu2 %v3593_v4, %s3392_s29 }
 0x224   : > { %1455 = vrot.lane.b32.xlu0 %v3578_v0, %s3396_s26 }
 0x22b   : > { %879 = vrot.lane.b32.xlu2 %v3602_v6, %s3394_s16 }
 0x22d   : > { %v544_v11 = vpop.xlane.xlu0 %543 }
 0x22e   : > { %3062 = vrcp.f32 %v544_v11  ;;  %v577_v6 = vand.u32 2147483648, %v544_v11  ;;  %v575_v21 = vand.u32 2147483647, %v544_v11  ;;  %vm571_vm3 = vweird.f32 %v544_v11 }
 0x22f   : > { %3064 = vpow2.f32 %v540_v14 }
 0x230   : > { %v578_v29 = vor.u32 1.1754944e-38, %v577_v6  ;;  %vm576_vm5 = vcmp.eq.f32.partialorder %v575_v21, 8.507059e+37 }
 0x234   : > { %v3063_v16 = vpop.eup %3062 }
 0x235   : > { %v567_v17 = vmul.f32 %v3063_v16, %v544_v11  ;;  %v547_v18 = vpop.xlane.xlu2 %546  ;;  %vm572_vm2 = vweird.f32 %v3063_v16  ;;  %v3761_v26 = vpop.eup %3064 }
 0x236   : > { %3066 = vrcp.f32 %v547_v18  ;;  %561 = vadd.xlane.f32.xlu1 %v560_v13  ;;  %v556_v20 = vpop.xlane.xlu1 %555  ;;  %vm573_vm4 = vmor %vm571_vm3, %vm572_vm2  ;;  %v563_v35 = vsel %vm493_vm1, %v3761_v26, 0.0  ;;  %v591_v44 = vand.u32 2147483648, %v547_v18  ;;  %v589_v46 = vand.u32 2147483647, %v547_v18 }
 0x237   : > { %v568_v23 = vsub.f32 1.0, %v567_v17  ;;  %3068 = vrcp.f32 %v556_v20  ;;  %vm585_vm7 = vweird.f32 %v547_v18  ;;  %vm627_vm11 = vweird.f32 %v556_v20 }
 0x238   : > { %v592_v52 = vor.u32 1.1754944e-38, %v591_v44  ;;  %vm590_vm10 = vcmp.eq.f32.partialorder %v589_v46, 8.507059e+37  ;;  %v631_v61 = vand.u32 2147483647, %v556_v20 }
 0x239   : > { %v569_v25 = vmul.f32 %v3063_v16, %v568_v23 }
 0x23a   : > { %vm632_vm13 = vcmp.eq.f32.partialorder %v631_v61, 8.507059e+37 }
 0x23b   : > { %v570_v27 = vadd.f32 %v3063_v16, %v569_v25 }
 0x23c   : > { %v3067_v28 = vpop.eup %3066 }
 0x23d   : > { %v3069_v30 = vpop.eup %3068  ;;  %v581_v31 = vmul.f32 %v3067_v28, %v547_v18  ;;  %v574_v33 = vsel %vm573_vm4, %v3063_v16, %v570_v27  ;;  %vm586_vm6 = vweird.f32 %v3067_v28  ;;  %v923_v10 = vpop.permute.xlu2 %922 }
 0x23e   : > { %v623_v36 = vmul.f32 %v3069_v30, %v556_v20  ;;  %564 = vadd.xlane.f32.xlu1 %v563_v35  ;;  %v579_v24 = vsel %vm576_vm5, %v578_v29, %v574_v33  ;;  %vm587_vm8 = vmor %vm585_vm7, %vm586_vm6  ;;  %vm628_vm9 = vweird.f32 %v3069_v30 }
 0x23f   : > { %v582_v40 = vsub.f32 1.0, %v581_v31  ;;  %v678_v42 = vmul.f32 %v3695_v32, %v579_v24  ;;  %v633_v32 = vand.u32 2147483648, %v556_v20  ;;  %vm629_vm12 = vmor %vm627_vm11, %vm628_vm9 }
 0x240   : > { %v624_v43 = vsub.f32 1.0, %v623_v36  ;;  %v843_v47 = vpop.permute.xlu0 %842 }
 0x241   : > { %2769 = vmatmul.msk.f32.vlgmr.msra.gmra.mxu0 %vm493_vm1, %v678_v42  ;;  %v583_v45 = vmul.f32 %v3067_v28, %v582_v40  ;;  %v634_v8 = vor.u32 1.1754944e-38, %v633_v32 }
 0x242   : > { %v625_v48 = vmul.f32 %v3069_v30, %v624_v43  ;;  %2777 = vmatpush.xpose.msk.msrb.mxu0 %vm324_vm0, %v843_v47 }
 0x243   : > { %v584_v50 = vadd.f32 %v3067_v28, %v583_v45 }
 0x244   : > { %v626_v57 = vadd.f32 %v3069_v30, %v625_v48 }
 0x245   : > { %v588_v54 = vsel %vm587_vm8, %v3067_v28, %v584_v50 }
 0x246   : > { %v593_v59 = vsel %vm590_vm10, %v592_v52, %v588_v54  ;;  %v630_v63 = vsel %vm629_vm12, %v3069_v30, %v626_v57 }
 0x247   : > { %v679_v60 = vmul.f32 %v3699_v37, %v593_v59  ;;  %v635_v11 = vsel %vm632_vm13, %v634_v8, %v630_v63 }
 0x248   : > { %v682_v16 = vmul.f32 %v3701_v39, %v635_v11  ;;  %v3787_v39 = vpop.permute.xlu0 %961 }
 0x249   : > { %2770 = vmatmul.msk.f32.vlgmr.msra.gmra.mxu2 %vm493_vm1, %v679_v60 }
 0x24a   : > { %2785 = vmatpush.xpose.msk.msra.mxu2 %vm324_vm0, %v3715_v41 }
 0x24e   : > { %v3772_v14 = vpop.permute.xlu1 %918  ;;  %2786 = vmatpush.xpose.msk.msra.mxu2 %vm324_vm0, %v923_v10 }
 0x251   : > { %2773 = vmatmul.msk.f32.vlgmr.msrb.gmra.mxu2 %vm493_vm1, %v682_v16 }
 0x256   : > { %v3777_v37 = vpop.permute.xlu1 %920 }
 0x257   : > { %838 = vrot.lane.b32.xlu1 %v3581_v1, %s3394_s16 }
 0x25e   : > { %v966_v17 = vpop.permute.xlu1 %965 }
 0x25f   : > { %881 = vrot.lane.b32.xlu1 %v3605_v7, %s3392_s29  ;;  %2789 = vmatpush.xpose.msk.msrb.mxu3 %vm324_vm0, %v966_v17 }
 0x266   : > { %v964_v41 = vpop.permute.xlu1 %963 }
 0x267   : > { %2790 = vmatpush.xpose.msk.msrb.mxu3 %vm324_vm0, %v964_v41  ;;  %2988 = vrot.lane.b32.xlu1 %v3617_v12, %s3395_s23 }
 0x26e   : > { %v3789_v18 = vpop.permute.xlu1 %959 }
 0x26f   : > { %1453 = vrot.lane.b32.xlu1 %v3590_v3, %s3396_s26 }
 0x273   : > { %v553_v13 = vpop.xlane.xlu0 %552 }
 0x274   : > { %v619_v63 = vand.u32 2147483648, %v553_v13  ;;  %vm613_vm9 = vweird.f32 %v553_v13  ;;  %v617_v10 = vand.u32 2147483647, %v553_v13 }
 0x276   : > { %v2984_v20 = vpop.permute.xlu1 %2983  ;;  %v559_v23 = vpop.xlane.xlu2 %558  ;;  %v620_v16 = vor.u32 1.1754944e-38, %v619_v63  ;;  %vm618_vm11 = vcmp.eq.f32.partialorder %v617_v10, 8.507059e+37 }
 0x277   : > { %v2985_v6 = vunpack.i.l.bf16 %v2984_v20  ;;  %3070 = vrcp.f32 %v559_v23  ;;  %v2986_v7 = vunpack.i.h.bf16 %v2984_v20  ;;  %v647_v12 = vand.u32 2147483648, %v559_v23 }
 0x278   : > { %3072 = vrcp.f32 %v553_v13  ;;  %v645_v35 = vand.u32 2147483647, %v559_v23  ;;  %vm641_vm15 = vweird.f32 %v559_v23 }
 0x279   : > { %747 = vmatpush.msra.mxu1 %v2985_v6  ;;  %v648_v24 = vor.u32 1.1754944e-38, %v647_v12 }
 0x27a   : > { %vm646_vm3 = vcmp.eq.f32.partialorder %v645_v35, 8.507059e+37 }
 0x27b   : > { %748 = vmatpush.msra.mxu1 %v2986_v7 }
 0x27d   : > { %v3071_v25 = vpop.eup %3070 }
 0x27e   : > { %v637_v21 = vmul.f32 %v3071_v25, %v559_v23  ;;  %v550_v27 = vpop.xlane.xlu2 %549  ;;  %v3073_v28 = vpop.eup %3072  ;;  %vm642_vm14 = vweird.f32 %v3071_v25 }
 0x27f   : > { %3074 = vrcp.f32 %v550_v27  ;;  %v609_v30 = vmul.f32 %v3073_v28, %v553_v13  ;;  %vm643_vm2 = vmor %vm641_vm15, %vm642_vm14  ;;  %v837_v48 = vpop.permute.xlu1 %836  ;;  %v605_v50 = vand.u32 2147483648, %v550_v27  ;;  %v603_v57 = vand.u32 2147483647, %v550_v27 }
 0x280   : > { %v638_v29 = vsub.f32 1.0, %v637_v21  ;;  %vm599_vm5 = vweird.f32 %v550_v27  ;;  %vm614_vm8 = vweird.f32 %v3073_v28 }
 0x281   : > { %v610_v40 = vsub.f32 1.0, %v609_v30  ;;  %v606_v59 = vor.u32 1.1754944e-38, %v605_v50  ;;  %vm604_vm7 = vcmp.eq.f32.partialorder %v603_v57, 8.507059e+37  ;;  %vm615_vm10 = vmor %vm613_vm9, %vm614_vm8 }
 0x282   : > { %v639_v31 = vmul.f32 %v3071_v25, %v638_v29 }
 0x283   : > { %v611_v52 = vmul.f32 %v3073_v28, %v610_v40 }
 0x284   : > { %v640_v33 = vadd.f32 %v3071_v25, %v639_v31 }
 0x285   : > { %v3075_v36 = vpop.eup %3074  ;;  %v612_v61 = vadd.f32 %v3073_v28, %v611_v52  ;;  %v1007_v52 = vld [vmem:[#allocation5 + $0x10] sm:$0xff] }
 0x286   : > { %v595_v42 = vmul.f32 %v3075_v36, %v550_v27  ;;  %v841_v43 = vpop.permute.xlu2 %840  ;;  %v644_v44 = vsel %vm643_vm2, %v3071_v25, %v640_v33  ;;  %vm600_vm4 = vweird.f32 %v3075_v36 }
 0x287   : > { %2778 = vmatpush.xpose.msk.msrb.mxu0 %vm324_vm0, %v841_v43  ;;  %v649_v45 = vsel %vm646_vm3, %v648_v24, %v644_v44  ;;  %vm601_vm6 = vmor %vm599_vm5, %vm600_vm4  ;;  %v616_v11 = vsel %vm615_vm10, %v3073_v28, %v612_v61  ;;  %v2992_v24 = vpack.i.bf16 %v3586_v2, %v3581_v1 }
 0x288   : > { %v596_v46 = vsub.f32 1.0, %v595_v42  ;;  %v683_v47 = vmul.f32 %v3729_v53, %v649_v45  ;;  %v621_v17 = vsel %vm618_vm11, %v620_v16, %v616_v11 }
 0x289   : > { %v681_v41 = vmul.f32 %v3725_v51, %v621_v17  ;;  %2993 = vrot.lane.b32.xlu2 %v2992_v24, %s3395_s23 }
 0x28a   : > { %v597_v54 = vmul.f32 %v3075_v36, %v596_v46  ;;  %2774 = vmatmul.msk.f32.gmra.mxu2 %vm493_vm1, %v683_v47  ;;  %2779 = vmatmul.msk.f32.vlgmr.msrb.gmra.mxu0 %vm324_vm0, %v837_v48 }
 0x28c   : > { %v598_v32 = vadd.f32 %v3075_v36, %v597_v54 }
 0x28e   : > { %v602_v60 = vsel %vm601_vm6, %v3075_v36, %v598_v32  ;;  %v880_v48 = vpop.permute.xlu2 %879 }
 0x28f   : > { %v607_v53 = vsel %vm604_vm7, %v606_v59, %v602_v60 }
 0x290   : > { %v680_v8 = vmul.f32 %v3741_v58, %v607_v53 }
 0x292   : > { %2771 = vmatmul.msk.f32.vlgmr.msra.gmra.mxu1 %vm493_vm1, %v680_v8  ;;  %2787 = vmatmul.msk.f32.vlgmr.msra.gmra.mxu2 %vm324_vm0, %v3772_v14  ;;  %v884_v14 = vpop.permute.xlu0 %883 }
 0x293   : > { %2781 = vmatpush.xpose.msk.msrb.mxu1 %vm324_vm0, %v884_v14 }
 0x29a   : > { %2772 = vmatmul.msk.f32.gmra.mxu1 %vm493_vm1, %v681_v41  ;;  %2788 = vmatmul.msk.f32.gmra.mxu2 %vm324_vm0, %v3777_v37  ;;  %v878_v47 = vpop.permute.xlu0 %877 }
 0x2a9   : > { %v562_v58 = vpop.xlane.xlu1 %561 }
 0x2aa   : > { %3076 = vrcp.f32 %v562_v58  ;;  %v661_v6 = vand.u32 2147483648, %v562_v58  ;;  %v659_v37 = vand.u32 2147483647, %v562_v58  ;;  %vm655_vm13 = vweird.f32 %v562_v58 }
 0x2ac   : > { %v662_v27 = vor.u32 1.1754944e-38, %v661_v6  ;;  %vm660_vm15 = vcmp.eq.f32.partialorder %v659_v37, 8.507059e+37 }
 0x2b0   : > { %v3077_v13 = vpop.eup %3076 }
 0x2b1   : > { %v651_v20 = vmul.f32 %v3077_v13, %v562_v58  ;;  %v565_v51 = vpop.xlane.xlu1 %564  ;;  %vm656_vm12 = vweird.f32 %v3077_v13 }
 0x2b2   : > { %3078 = vrcp.f32 %v565_v51  ;;  %vm657_vm14 = vmor %vm655_vm13, %vm656_vm12  ;;  %v675_v35 = vand.u32 2147483648, %v565_v51  ;;  %v673_v36 = vand.u32 2147483647, %v565_v51  ;;  %vm669_vm3 = vweird.f32 %v565_v51 }
 0x2b3   : > { %v652_v23 = vsub.f32 1.0, %v651_v20 }
 0x2b4   : > { %v676_v42 = vor.u32 1.1754944e-38, %v675_v35  ;;  %vm674_vm5 = vcmp.eq.f32.partialorder %v673_v36, 8.507059e+37 }
 0x2b5   : > { %v653_v7 = vmul.f32 %v3077_v13, %v652_v23 }
 0x2b7   : > { %v654_v25 = vadd.f32 %v3077_v13, %v653_v7 }
 0x2b8   : > { %v3079_v21 = vpop.eup %3078 }
 0x2b9   : > { %v658_v28 = vsel %vm657_vm14, %v3077_v13, %v654_v25  ;;  %v665_v29 = vmul.f32 %v3079_v21, %v565_v51  ;;  %vm670_vm2 = vweird.f32 %v3079_v21 }
 0x2ba   : > { %v663_v12 = vsel %vm660_vm15, %v662_v27, %v658_v28  ;;  %vm671_vm4 = vmor %vm669_vm3, %vm670_vm2 }
 0x2bb   : > { %v666_v30 = vsub.f32 1.0, %v665_v29  ;;  %v684_v31 = vmul.f32 %v3757_v15, %v663_v12 }
 0x2bd   : > { %v667_v33 = vmul.f32 %v3079_v21, %v666_v30  ;;  %2775 = vmatmul.msk.f32.vlgmr.msra.gmra.mxu3 %vm493_vm1, %v684_v31 }
 0x2bf   : > { %v668_v40 = vadd.f32 %v3079_v21, %v667_v33 }
 0x2c1   : > { %v672_v43 = vsel %vm671_vm4, %v3079_v21, %v668_v40 }
 0x2c2   : > { %v677_v44 = vsel %vm674_vm5, %v676_v42, %v672_v43 }
 0x2c3   : > { %v685_v15 = vmul.f32 %v3761_v26, %v677_v44  ;;  %v3823_v26 = vpop.f32.mrf.mxu0 }
 0x2c5   : > { %2776 = vmatmul.msk.f32.gmra.mxu3 %vm493_vm1, %v685_v15 }
 0x2c9   : > { %v839_v45 = vpop.permute.xlu1 %838 }
 0x2ca   : > { %2780 = vmatmul.msk.f32.gmra.mxu0 %vm324_vm0, %v839_v45 }
 0x2cd   : > { %2791 = vmatmul.msk.f32.vlgmr.msrb.gmra.mxu3 %vm324_vm0, %v3789_v18 }
 0x2d1   : > { %v882_v46 = vpop.permute.xlu1 %881 }
 0x2d2   : > { %2782 = vmatpush.xpose.msk.msrb.mxu1 %vm324_vm0, %v882_v46 }
 0x2d5   : > { %2783 = vmatmul.msk.f32.vlgmr.msrb.gmra.mxu1 %vm324_vm0, %v878_v47  ;;  %2792 = vmatmul.msk.f32.gmra.mxu3 %vm324_vm0, %v3787_v39  ;;  %v3834_v39 = vpop.f32.mrf.mxu2 }
 0x2dd   : > { %2784 = vmatmul.msk.f32.gmra.mxu1 %vm324_vm0, %v880_v48  ;;  %v3838_v59 = vpop.f32.mrf.mxu2  ;;  %v1456_v48 = vpop.permute.xlu0 %1455 }
 0x2e3   : > { %v2994_v11 = vpop.permute.xlu2 %2993 }
 0x2e4   : > { %v2996_v16 = vunpack.i.h.bf16 %v2994_v11  ;;  %v2995_v17 = vunpack.i.l.bf16 %v2994_v11 }
 0x2e6   : > { %1243 = vmatpush.msra.mxu0 %v2995_v17  ;;  %1348 = vmatpush.msra.mxu3 %v2996_v16 }
 0x307   : > { %v869_v50 = vpop.f32.mrf.mxu0 }
 0x308   : > { %v998_v54 = vmul.f32 0.35355338, %v869_v50  ;;  %v2997_v50 = vpack.i.bf16 %v3596_v5, %v3593_v4 }
 0x30a   : > { %v1009_v57 = vadd.f32 %v1007_v52, %v998_v54 }
 0x30c   : > { %v3826_v18 = vadd.f32 %v1009_v57, %v3647_v22 }
 0x30d   : > { %v3844_v61 = vpop.f32.mrf.mxu2 }
 0x30e   : > { %v1025_v32 = vsel %vm493_vm1, %v3826_v18, -inf }
 0x30f   : > { %1026 = vmax.xlane.f32.xlu2 %v1025_v32  ;;  %v3840_v60 = vpop.f32.mrf.mxu1 }
 0x315   : > { %v951_v14 = vpop.f32.mrf.mxu2 }
 0x316   : > { %v1002_v23 = vmul.f32 0.35355338, %v951_v14 }
 0x317   : > { %v3848_v10 = vpop.f32.mrf.mxu1 }
 0x318   : > { %v1013_v37 = vadd.f32 %v1007_v52, %v1002_v23 }
 0x31a   : > { %v3861_v30 = vadd.f32 %v1013_v37, %v3654_v34 }
 0x31c   : > { %v1037_v43 = vsel %vm493_vm1, %v3861_v30, -inf }
 0x31d   : > { %v954_v27 = vpop.f32.mrf.mxu2 }
 0x31e   : > { %v1003_v31 = vmul.f32 0.35355338, %v954_v27 }
 0x327   : > { %1373 = vrot.lane.b32.xlu2 %v3581_v1, %s3396_s26  ;;  %v1008_v1 = vld [vmem:[#allocation5 + $0x18] sm:$0xff] }
 0x328   : > { %v1014_v40 = vadd.f32 %v1008_v1, %v1003_v31 }
 0x32f   : > { %3003 = vrot.lane.b32.xlu2 %v3735_v55, %s3395_s23 }
 0x337   : > { %1494 = vrot.lane.b32.xlu2 %v3596_v5, %s3396_s26 }
 0x340   : > { %v3842_v22 = vpop.f32.mrf.mxu3 }
 0x347   : > { %v872_v63 = vpop.f32.mrf.mxu0 }
 0x348   : > { %v999_v53 = vmul.f32 0.35355338, %v872_v63  ;;  %v3846_v8 = vpop.f32.mrf.mxu3 }
 0x34a   : > { %v1010_v55 = vadd.f32 %v1008_v1, %v999_v53 }
 0x34c   : > { %v3851_v41 = vadd.f32 %v1010_v55, %v3656_v38 }
 0x34e   : > { %v1028_v58 = vsel %vm493_vm1, %v3851_v41, -inf }
 0x34f   : > { %1029 = vmax.xlane.f32.xlu0 %v1028_v58 }
 0x350   : > { %v992_v13 = vpop.f32.mrf.mxu3 }
 0x351   : > { %v1004_v35 = vmul.f32 0.35355338, %v992_v13 }
 0x352   : > { %v910_v20 = vpop.f32.mrf.mxu1 }
 0x353   : > { %v1000_v51 = vmul.f32 0.35355338, %v910_v20  ;;  %v1015_v42 = vadd.f32 %v1007_v52, %v1004_v35 }
 0x355   : > { %v1011_v6 = vadd.f32 %v1007_v52, %v1000_v51  ;;  %v1023_v44 = vadd.f32 %v1015_v42, %v3674_v62 }
 0x357   : > { %v3856_v7 = vadd.f32 %v1011_v6, %v3667_v56  ;;  %v1043_v15 = vsel %vm493_vm1, %v1023_v44, -inf }
 0x358   : > { %v995_v25 = vpop.f32.mrf.mxu3 }
 0x359   : > { %v1005_v21 = vmul.f32 0.35355338, %v995_v25  ;;  %v1031_v38 = vsel %vm493_vm1, %v3856_v7, -inf }
 0x35a   : > { %1032 = vmax.xlane.f32.xlu1 %v1031_v38  ;;  %v913_v28 = vpop.f32.mrf.mxu1 }
 0x35b   : > { %v1016_v29 = vadd.f32 %v1008_v1, %v1005_v21  ;;  %v1001_v12 = vmul.f32 0.35355338, %v913_v28 }
 0x35d   : > { %v1012_v33 = vadd.f32 %v1008_v1, %v1001_v12  ;;  %v3864_v56 = vadd.f32 %v1016_v29, %v3687_v19  ;;  %v1022_v19 = vadd.f32 %v1014_v40, %v3662_v49 }
 0x35f   : > { %v1046_v36 = vsel %vm493_vm1, %v3864_v56, -inf  ;;  %v1020_v24 = vadd.f32 %v1012_v33, %v3676_v9  ;;  %v1040_v45 = vsel %vm493_vm1, %v1022_v19, -inf  ;;  %v2989_v9 = vpop.permute.xlu1 %2988 }
 0x360   : > { %1047 = vmax.xlane.f32.xlu2 %v1046_v36  ;;  %v2991_v46 = vunpack.i.h.bf16 %v2989_v9  ;;  %v2990_v47 = vunpack.i.l.bf16 %v2989_v9  ;;  %v3944_v9 = vld [vmem:[%s3563_s7 + $0x18] sm:$0xff] }
 0x361   : > { %v1034_v34 = vsel %vm493_vm1, %v1020_v24, -inf }
 0x362   : > { %1038 = vmax.xlane.f32.xlu1 %v1037_v43  ;;  %1035 = vmax.xlane.f32.xlu0 %v1034_v34  ;;  %v3927_v34 = vld [vmem:[%s3563_s7 + $0x30] sm:$0xff] }
 0x363   : > { %1313 = vmatpush.msrb.mxu2 %v2990_v47 }
 0x365   : > { %1314 = vmatpush.msrb.mxu2 %v2991_v46  ;;  %v3949_v46 = vld [vmem:[%s3563_s7 + $0x10] sm:$0xff] }
 0x367   : > { %2809 = vmatpush.xpose.msk.msra.mxu2 %vm324_vm0, %v1456_v48  ;;  %v1454_v62 = vpop.permute.xlu1 %1453 }
 0x36a   : > { %1044 = vmax.xlane.f32.xlu1 %v1043_v15  ;;  %1041 = vmax.xlane.f32.xlu0 %v1040_v45  ;;  %v3939_v45 = vld [vmem:[%s3563_s7 + $0x8] sm:$0xff] }
 0x36b   : > { %2810 = vmatpush.xpose.msk.msra.mxu2 %vm324_vm0, %v1454_v62 }
 0x37e   : > { %2998 = vrot.lane.b32.xlu0 %v2997_v50, %s3395_s23 }
 0x382   : > { %v1027_v49 = vpop.xlane.xlu2 %1026 }
 0x383   : > { %1449 = vrot.lane.b32.xlu1 %v3590_v3, %s3397_s28  ;;  %v1049_v52 = vsub.f32 %v3826_v18, %v1027_v49 }
 0x385   : > { %v1057_v54 = vmul.f32 1.442695, %v1049_v52 }
 0x387   : > { %3080 = vpow2.f32 %v1057_v54 }
 0x38a   : > { %v1374_v5 = vpop.permute.xlu2 %1373 }
 0x38b   : > { %1451 = vrot.lane.b32.xlu1 %v3578_v0, %s3397_s28 }
 0x38d   : > { %v3890_v57 = vpop.eup %3080 }
 0x38e   : > { %v1073_v3 = vsel %vm493_vm1, %v3890_v57, 0.0 }
 0x392   : > { %v3004_v32 = vpop.permute.xlu2 %3003 }
 0x393   : > { %1496 = vrot.lane.b32.xlu1 %v3586_v2, %s3396_s26  ;;  %v3006_v63 = vunpack.i.h.bf16 %v3004_v32  ;;  %v3005_v0 = vunpack.i.l.bf16 %v3004_v32 }
 0x395   : > { %1278 = vmatpush.msra.mxu1 %v3005_v0 }
 0x397   : > { %1279 = vmatpush.msra.mxu1 %v3006_v63 }
 0x39a   : > { %v1495_v15 = vpop.permute.xlu2 %1494 }
 0x39b   : > { %1371 = vrot.lane.b32.xlu1 %v3593_v4, %s3396_s26 }
 0x3a8   : > { %1074 = vadd.xlane.f32.xlu0 %v1073_v3 }
 0x3c2   : > { %v1030_v2 = vpop.xlane.xlu0 %1029 }
 0x3c3   : > { %v1050_v18 = vsub.f32 %v3851_v41, %v1030_v2 }
 0x3c5   : > { %v1059_v53 = vmul.f32 1.442695, %v1050_v18 }
 0x3c7   : > { %3082 = vpow2.f32 %v1059_v53 }
 0x3cd   : > { %v3895_v1 = vpop.eup %3082  ;;  %v1033_v4 = vpop.xlane.xlu1 %1032 }
 0x3ce   : > { %v1051_v55 = vsub.f32 %v3856_v7, %v1033_v4  ;;  %v1076_v11 = vsel %vm493_vm1, %v3895_v1, 0.0 }
 0x3cf   : > { %1077 = vadd.xlane.f32.xlu0 %v1076_v11 }
 0x3d0   : > { %v1061_v16 = vmul.f32 1.442695, %v1051_v55 }
 0x3d2   : > { %3084 = vpow2.f32 %v1061_v16  ;;  %v3964_v16 = vld [vmem:[%s3563_s7 + $0x38] sm:$0xff] }
 0x3d3   : > { %v1048_v47 = vpop.xlane.xlu2 %1047 }
 0x3d4   : > { %v1056_v48 = vsub.f32 %v3864_v56, %v1048_v47 }
 0x3d5   : > { %v1039_v17 = vpop.xlane.xlu1 %1038  ;;  %v1036_v58 = vpop.xlane.xlu0 %1035 }
 0x3d6   : > { %v1053_v14 = vsub.f32 %v3861_v30, %v1039_v17  ;;  %v1052_v13 = vsub.f32 %v1020_v24, %v1036_v58  ;;  %v1071_v62 = vmul.f32 1.442695, %v1056_v48 }
 0x3d8   : > { %v3901_v20 = vpop.eup %3084  ;;  %v1065_v41 = vmul.f32 1.442695, %v1053_v14  ;;  %v1063_v51 = vmul.f32 1.442695, %v1052_v13 }
 0x3d9   : > { %v1079_v23 = vsel %vm493_vm1, %v3901_v20, 0.0 }
 0x3da   : > { %3086 = vpow2.f32 %v1065_v41  ;;  %1080 = vadd.xlane.f32.xlu2 %v1079_v23 }
 0x3db   : > { %3088 = vpow2.f32 %v1063_v51 }
 0x3dd   : > { %v1045_v6 = vpop.xlane.xlu1 %1044  ;;  %v1042_v7 = vpop.xlane.xlu0 %1041 }
 0x3de   : > { %v1055_v37 = vsub.f32 %v1023_v44, %v1045_v6  ;;  %v1054_v25 = vsub.f32 %v1022_v19, %v1042_v7  ;;  %v3932_v44 = vld [vmem:[%s3563_s7] sm:$0xff] }
 0x3e0   : > { %v3905_v21 = vpop.eup %3086  ;;  %v1069_v38 = vmul.f32 1.442695, %v1055_v37  ;;  %v1067_v27 = vmul.f32 1.442695, %v1054_v25 }
 0x3e1   : > { %v3907_v28 = vpop.eup %3088  ;;  %v1085_v29 = vsel %vm493_vm1, %v3905_v21, 0.0 }
 0x3e2   : > { %3090 = vpow2.f32 %v1069_v38  ;;  %1086 = vadd.xlane.f32.xlu2 %v1085_v29  ;;  %v1082_v12 = vsel %vm493_vm1, %v3907_v28, 0.0 }
 0x3e3   : > { %3092 = vpow2.f32 %v1067_v27  ;;  %1083 = vadd.xlane.f32.xlu0 %v1082_v12 }
 0x3e8   : > { %v3913_v30 = vpop.eup %3090 }
 0x3e9   : > { %v3915_v31 = vpop.eup %3092  ;;  %v1091_v35 = vsel %vm493_vm1, %v3913_v30, 0.0 }
 0x3ea   : > { %1092 = vadd.xlane.f32.xlu2 %v1091_v35  ;;  %v1088_v33 = vsel %vm493_vm1, %v3915_v31, 0.0 }
 0x3eb   : > { %1089 = vadd.xlane.f32.xlu1 %v1088_v33 }
 0x3f0   : > { %v2999_v36 = vpop.permute.xlu0 %2998 }
 0x3f1   : > { %v3001_v24 = vunpack.i.h.bf16 %v2999_v36  ;;  %v3000_v40 = vunpack.i.l.bf16 %v2999_v36 }
 0x3f3   : > { %1244 = vmatpush.msra.mxu0 %v3000_v40  ;;  %1349 = vmatpush.msra.mxu3 %v3001_v24 }
 0x3f5   : > { %2801 = vmatpush.xpose.msk.msrb.mxu0 %vm324_vm0, %v1374_v5  ;;  %v3922_v42 = vpop.permute.xlu1 %1449 }
 0x3f7   : > { %1414 = vrot.lane.b32.xlu0 %v3944_v9, %s3396_s26 }
 0x3fd   : > { %v3924_v43 = vpop.permute.xlu1 %1451 }
 0x402   : > { %1490 = vrot.lane.b32.xlu2 %v3927_v34, %s3397_s28 }
 0x404   : > { %1367 = vrot.lane.b32.xlu1 %v3932_v44, %s3397_s28 }
 0x405   : > { %v1497_v19 = vpop.permute.xlu1 %1496 }
 0x406   : > { %2813 = vmatpush.xpose.msk.msrb.mxu3 %vm324_vm0, %v1497_v19 }
 0x40a   : > { %2814 = vmatpush.xpose.msk.msrb.mxu3 %vm324_vm0, %v1495_v15 }
 0x40c   : > { %1369 = vrot.lane.b32.xlu1 %v3939_v45, %s3397_s28 }
 0x40d   : > { %v1372_v55 = vpop.permute.xlu1 %1371 }
 0x40e   : > { %2802 = vmatpush.xpose.msk.msrb.mxu0 %vm324_vm0, %v1372_v55 }
 0x414   : > { %1412 = vrot.lane.b32.xlu1 %v3949_v46, %s3396_s26  ;;  %s2631_s26 = scalar_lea.hbm %s4485_s5, %s2866_s11 }
 0x41b   : > { %v1075_v50 = vpop.xlane.xlu0 %1074 }
 0x41c   : > { %3094 = vrcp.f32 %v1075_v50  ;;  %1410 = vrot.lane.b32.xlu1 %v3944_v9, %s3397_s28  ;;  %v1108_v5 = vand.u32 2147483648, %v1075_v50  ;;  %v1106_v63 = vand.u32 2147483647, %v1075_v50  ;;  %vm1102_vm7 = vweird.f32 %v1075_v50 }
 0x41d   : > { %3096 = vpow2.f32 %v1071_v62 }
 0x41e   : > { %v1109_v56 = vor.u32 1.1754944e-38, %v1108_v5  ;;  %vm1107_vm9 = vcmp.eq.f32.partialorder %v1106_v63, 8.507059e+37 }
 0x422   : > { %v3095_v49 = vpop.eup %3094 }
 0x423   : > { %v1098_v52 = vmul.f32 %v3095_v49, %v1075_v50  ;;  %v3956_v32 = vpop.eup %3096  ;;  %vm1103_vm6 = vweird.f32 %v3095_v49 }
 0x424   : > { %vm1104_vm8 = vmor %vm1102_vm7, %vm1103_vm6  ;;  %v1094_v2 = vsel %vm493_vm1, %v3956_v32, 0.0 }
 0x425   : > { %v1099_v54 = vsub.f32 1.0, %v1098_v52 }
 0x427   : > { %v1100_v3 = vmul.f32 %v3095_v49, %v1099_v54 }
 0x429   : > { %v1101_v0 = vadd.f32 %v3095_v49, %v1100_v3 }
 0x42b   : > { %v1105_v18 = vsel %vm1104_vm8, %v3095_v49, %v1101_v0  ;;  %1095 = vadd.xlane.f32.xlu2 %v1094_v2 }
 0x42c   : > { %v1110_v53 = vsel %vm1107_vm9, %v1109_v56, %v1105_v18 }
 0x42d   : > { %v1209_v4 = vmul.f32 %v3890_v57, %v1110_v53 }
 0x42f   : > { %2793 = vmatmul.msk.f32.vlgmr.msra.gmra.mxu0 %vm493_vm1, %v1209_v4 }
 0x442   : > { %v1078_v11 = vpop.xlane.xlu0 %1077 }
 0x443   : > { %3098 = vrcp.f32 %v1078_v11  ;;  %1492 = vrot.lane.b32.xlu2 %v3964_v16, %s3397_s28  ;;  %v1122_v13 = vand.u32 2147483648, %v1078_v11  ;;  %v1120_v51 = vand.u32 2147483647, %v1078_v11  ;;  %vm1116_vm11 = vweird.f32 %v1078_v11 }
 0x445   : > { %v1123_v6 = vor.u32 1.1754944e-38, %v1122_v13  ;;  %vm1121_vm13 = vcmp.eq.f32.partialorder %v1120_v51, 8.507059e+37 }
 0x449   : > { %v3099_v17 = vpop.eup %3098 }
 0x44a   : > { %v1112_v58 = vmul.f32 %v3099_v17, %v1078_v11  ;;  %vm1117_vm10 = vweird.f32 %v3099_v17 }
 0x44b   : > { %1408 = vrot.lane.b32.xlu2 %v3949_v46, %s3397_s28  ;;  %vm1118_vm12 = vmor %vm1116_vm11, %vm1117_vm10  ;;  %s2632_s28 = sshll.u32 %s295_s12, 4  ;;  %s2633_s28 = int_to_ptr.vmem [resolvable:$true] %s2632_s28 }
 0x44c   : > { %v1113_v14 = vsub.f32 1.0, %v1112_v58 }
 0x44d   : > { %v1081_v57 = vpop.xlane.xlu2 %1080 }
 0x44e   : > { %v1114_v41 = vmul.f32 %v3099_v17, %v1113_v14  ;;  %3100 = vrcp.f32 %v1081_v57  ;;  %v1136_v33 = vand.u32 2147483648, %v1081_v57  ;;  %v1134_v24 = vand.u32 2147483647, %v1081_v57 }
 0x44f   : > { %vm1130_vm15 = vweird.f32 %v1081_v57 }
 0x450   : > { %v1115_v23 = vadd.f32 %v3099_v17, %v1114_v41  ;;  %v1137_v15 = vor.u32 1.1754944e-38, %v1136_v33  ;;  %vm1135_vm3 = vcmp.eq.f32.partialorder %v1134_v24, 8.507059e+37 }
 0x452   : > { %v1119_v7 = vsel %vm1118_vm12, %v3099_v17, %v1115_v23 }
 0x453   : > { %v1124_v37 = vsel %vm1121_vm13, %v1123_v6, %v1119_v7 }
 0x454   : > { %v3101_v25 = vpop.eup %3100  ;;  %v1210_v38 = vmul.f32 %v3895_v1, %v1124_v37 }
 0x455   : > { %v1126_v27 = vmul.f32 %v3101_v25, %v1081_v57  ;;  %v1087_v29 = vpop.xlane.xlu2 %1086  ;;  %vm1131_vm14 = vweird.f32 %v3101_v25 }
 0x456   : > { %3102 = vrcp.f32 %v1087_v29  ;;  %v1084_v12 = vpop.xlane.xlu0 %1083  ;;  %2794 = vmatmul.msk.f32.gmra.mxu0 %vm493_vm1, %v1210_v38  ;;  %vm1132_vm2 = vmor %vm1130_vm15, %vm1131_vm14  ;;  %v1164_v5 = vand.u32 2147483648, %v1087_v29  ;;  %v1162_v56 = vand.u32 2147483647, %v1087_v29  ;;  %vm1158_vm6 = vweird.f32 %v1087_v29 }
 0x457   : > { %v1127_v35 = vsub.f32 1.0, %v1126_v27  ;;  %3104 = vrcp.f32 %v1084_v12  ;;  %v1150_v2 = vand.u32 2147483648, %v1084_v12  ;;  %v1148_v53 = vand.u32 2147483647, %v1084_v12 }
 0x458   : > { %v1165_v11 = vor.u32 1.1754944e-38, %v1164_v5  ;;  %vm1144_vm8 = vweird.f32 %v1084_v12  ;;  %vm1163_vm9 = vcmp.eq.f32.partialorder %v1162_v56, 8.507059e+37 }
 0x459   : > { %v1128_v36 = vmul.f32 %v3101_v25, %v1127_v35  ;;  %vm1149_vm11 = vcmp.eq.f32.partialorder %v1148_v53, 8.507059e+37 }
 0x45b   : > { %v1129_v40 = vadd.f32 %v3101_v25, %v1128_v36 }
 0x45c   : > { %v3103_v19 = vpop.eup %3102 }
 0x45d   : > { %v3105_v47 = vpop.eup %3104  ;;  %v1133_v48 = vsel %vm1132_vm2, %v3101_v25, %v1129_v40  ;;  %v1154_v1 = vmul.f32 %v3103_v19, %v1087_v29  ;;  %v1093_v50 = vpop.xlane.xlu2 %1092  ;;  %vm1159_vm4 = vweird.f32 %v3103_v19 }
 0x45e   : > { %v1138_v62 = vsel %vm1135_vm3, %v1137_v15, %v1133_v48  ;;  %v1140_v49 = vmul.f32 %v3105_v47, %v1084_v12  ;;  %3106 = vrcp.f32 %v1093_v50  ;;  %v1090_v52 = vpop.xlane.xlu1 %1089  ;;  %vm1145_vm5 = vweird.f32 %v3105_v47  ;;  %vm1160_vm7 = vmor %vm1158_vm6, %vm1159_vm4 }
 0x45f   : > { %v1155_v54 = vsub.f32 1.0, %v1154_v1  ;;  %3108 = vrcp.f32 %v1090_v52  ;;  %v1211_v63 = vmul.f32 %v3901_v20, %v1138_v62  ;;  %v1151_v20 = vor.u32 1.1754944e-38, %v1150_v2  ;;  %vm1146_vm10 = vmor %vm1144_vm8, %vm1145_vm5 }
 0x460   : > { %v1141_v3 = vsub.f32 1.0, %v1140_v49  ;;  %v1192_v37 = vand.u32 2147483648, %v1093_v50  ;;  %v1190_v29 = vand.u32 2147483647, %v1093_v50  ;;  %v1178_v12 = vand.u32 2147483648, %v1090_v52 }
 0x461   : > { %v1156_v0 = vmul.f32 %v3103_v19, %v1155_v54  ;;  %2795 = vmatmul.msk.f32.vlgmr.msra.gmra.mxu1 %vm493_vm1, %v1211_v63  ;;  %v1176_v33 = vand.u32 2147483647, %v1090_v52  ;;  %vm1186_vm14 = vweird.f32 %v1093_v50  ;;  %vm1172_vm2 = vweird.f32 %v1090_v52 }
 0x462   : > { %v1142_v18 = vmul.f32 %v3105_v47, %v1141_v3  ;;  %v1193_v24 = vor.u32 1.1754944e-38, %v1192_v37  ;;  %vm1191_vm3 = vcmp.eq.f32.partialorder %v1190_v29, 8.507059e+37  ;;  %v4010_v29 = vld [vmem:[#allocation7 + $0x8] sm:$0xff] }
 0x463   : > { %v1157_v4 = vadd.f32 %v3103_v19, %v1156_v0  ;;  %vm1177_vm5 = vcmp.eq.f32.partialorder %v1176_v33, 8.507059e+37 }
 0x464   : > { %v3107_v55 = vpop.eup %3106  ;;  %v1143_v17 = vadd.f32 %v3105_v47, %v1142_v18 }
 0x465   : > { %v3109_v58 = vpop.eup %3108  ;;  %v1161_v14 = vsel %vm1160_vm7, %v3103_v19, %v1157_v4  ;;  %v1182_v13 = vmul.f32 %v3107_v55, %v1093_v50  ;;  %vm1187_vm12 = vweird.f32 %v3107_v55 }
 0x466   : > { %v1166_v57 = vsel %vm1163_vm9, %v1165_v11, %v1161_v14  ;;  %v1168_v41 = vmul.f32 %v3109_v58, %v1090_v52  ;;  %v1147_v51 = vsel %vm1146_vm10, %v3105_v47, %v1143_v17  ;;  %vm1173_vm13 = vweird.f32 %v3109_v58  ;;  %vm1188_vm15 = vmor %vm1186_vm14, %vm1187_vm12  ;;  %v3181_v14 = vld [vmem:[%s3563_s7 + $0x20] sm:$0xff] }
 0x467   : > { %v1183_v23 = vsub.f32 1.0, %v1182_v13  ;;  %v1152_v6 = vsel %vm1149_vm11, %v1151_v20, %v1147_v51  ;;  %v1213_v7 = vmul.f32 %v3905_v21, %v1166_v57  ;;  %vm1174_vm4 = vmor %vm1172_vm2, %vm1173_vm13  ;;  %v1538_v57 = vld [vmem:[#allocation5 + $0x20] sm:$0xff] }
 0x468   : > { %v1169_v25 = vsub.f32 1.0, %v1168_v41  ;;  %v1212_v38 = vmul.f32 %v3907_v28, %v1152_v6  ;;  %v1179_v28 = vor.u32 1.1754944e-38, %v1178_v12 }
 0x469   : > { %v1184_v27 = vmul.f32 %v3107_v55, %v1183_v23  ;;  %2797 = vmatmul.msk.f32.vlgmr.msrb.gmra.mxu2 %vm493_vm1, %v1213_v7  ;;  %v1415_v49 = vpop.permute.xlu0 %1414  ;;  %v4003_v23 = vld [vmem:[#allocation7] sm:$0xff] }
 0x46a   : > { %v1170_v35 = vmul.f32 %v3109_v58, %v1169_v25  ;;  %2796 = vmatmul.msk.f32.gmra.mxu1 %vm493_vm1, %v1212_v38  ;;  %v1539_v25 = vld [vmem:[#allocation5 + $0x28] sm:$0xff] }
 0x46b   : > { %v1185_v36 = vadd.f32 %v3107_v55, %v1184_v27  ;;  %2805 = vmatpush.xpose.msk.msrb.mxu1 %vm324_vm0, %v1415_v49 }
 0x46c   : > { %v1171_v21 = vadd.f32 %v3109_v58, %v1170_v35 }
 0x46d   : > { %v1189_v40 = vsel %vm1188_vm15, %v3107_v55, %v1185_v36 }
 0x46e   : > { %v1194_v19 = vsel %vm1191_vm3, %v1193_v24, %v1189_v40  ;;  %v1175_v15 = vsel %vm1174_vm4, %v3109_v58, %v1171_v21  ;;  %v3180_v58 = vld [vmem:[%s3563_s7 + $0x28] sm:$0xff] }
 0x46f   : > { %v1180_v47 = vsel %vm1177_vm5, %v1179_v28, %v1175_v15  ;;  %v1215_v48 = vmul.f32 %v3913_v30, %v1194_v19  ;;  %v3007_v20 = vpack.i.bf16 %v3181_v14, %v3180_v58  ;;  %v4055_v14 = vld [vmem:[#allocation7 + $0x30] sm:$0xff] }
 0x470   : > { %v1214_v1 = vmul.f32 %v3915_v31, %v1180_v47  ;;  %v1491_v31 = vpop.permute.xlu2 %1490 }
 0x471   : > { %2799 = vmatmul.msk.f32.vlgmr.msra.gmra.mxu3 %vm493_vm1, %v1215_v48  ;;  %3008 = vrot.lane.b32.xlu2 %v3007_v20, %s3398_s13 }
 0x472   : > { %2798 = vmatmul.msk.f32.gmra.mxu2 %vm493_vm1, %v1214_v1  ;;  %v4027_v1 = vld [vmem:[#allocation7 + $0x10] sm:$0xff] }
 0x476   : > { %v1368_v50 = vpop.permute.xlu1 %1367 }
 0x477   : > { %2803 = vmatmul.msk.f32.vlgmr.msrb.gmra.mxu0 %vm324_vm0, %v1368_v50 }
 0x47a   : > { %2811 = vmatmul.msk.f32.vlgmr.msra.gmra.mxu2 %vm324_vm0, %v3922_v42 }
 0x47e   : > { %v1370_v62 = vpop.permute.xlu1 %1369 }
 0x47f   : > { %2804 = vmatmul.msk.f32.gmra.mxu0 %vm324_vm0, %v1370_v62 }
 0x482   : > { %2812 = vmatmul.msk.f32.gmra.mxu2 %vm324_vm0, %v3924_v43 }
 0x486   : > { %v1413_v30 = vpop.permute.xlu1 %1412 }
 0x487   : > { %2806 = vmatpush.xpose.msk.msrb.mxu1 %vm324_vm0, %v1413_v30 }
 0x48e   : > { %v1411_v11 = vpop.permute.xlu1 %1410 }
 0x49e   : > { %v1096_v52 = vpop.xlane.xlu2 %1095 }
 0x49f   : > { %3110 = vrcp.f32 %v1096_v52  ;;  %v1206_v42 = vand.u32 2147483648, %v1096_v52  ;;  %v1204_v56 = vand.u32 2147483647, %v1096_v52  ;;  %vm1200_vm7 = vweird.f32 %v1096_v52 }
 0x4a1   : > { %v1207_v2 = vor.u32 1.1754944e-38, %v1206_v42  ;;  %vm1205_vm9 = vcmp.eq.f32.partialorder %v1204_v56, 8.507059e+37 }
 0x4a5   : > { %v3111_v54 = vpop.eup %3110 }
 0x4a6   : > { %v1196_v5 = vmul.f32 %v3111_v54, %v1096_v52  ;;  %v1493_v3 = vpop.permute.xlu2 %1492  ;;  %vm1201_vm6 = vweird.f32 %v3111_v54 }
 0x4a7   : > { %vm1202_vm8 = vmor %vm1200_vm7, %vm1201_vm6 }
 0x4a8   : > { %v1197_v63 = vsub.f32 1.0, %v1196_v5 }
 0x4aa   : > { %v1198_v0 = vmul.f32 %v3111_v54, %v1197_v63  ;;  %v4036_v63 = vld [vmem:[#allocation7 + $0x20] sm:$0xff] }
 0x4ac   : > { %v1199_v43 = vadd.f32 %v3111_v54, %v1198_v0  ;;  %v3996_v17 = vpop.f32.mrf.mxu0  ;;  %v4041_v0 = vld [vmem:[#allocation7 + $0x18] sm:$0xff] }
 0x4ae   : > { %v1409_v18 = vpop.permute.xlu2 %1408  ;;  %v1203_v53 = vsel %vm1202_vm8, %v3111_v54, %v1199_v43 }
 0x4af   : > { %2807 = vmatmul.msk.f32.vlgmr.msrb.gmra.mxu1 %vm324_vm0, %v1409_v18  ;;  %v1208_v4 = vsel %vm1205_vm9, %v1207_v2, %v1203_v53 }
 0x4b0   : > { %v1216_v55 = vmul.f32 %v3956_v32, %v1208_v4 }
 0x4b2   : > { %2800 = vmatmul.msk.f32.gmra.mxu3 %vm493_vm1, %v1216_v55  ;;  %v4050_v55 = vld [vmem:[#allocation7 + $0x28] sm:$0xff] }
 0x4b7   : > { %2808 = vmatmul.msk.f32.gmra.mxu1 %vm324_vm0, %v1411_v11 }
 0x4ba   : > { %2815 = vmatmul.msk.f32.vlgmr.msrb.gmra.mxu3 %vm324_vm0, %v1491_v31 }
 0x4c2   : > { %2816 = vmatmul.msk.f32.gmra.mxu3 %vm324_vm0, %v1493_v3 }
 0x4d3   : > { %v4001_v13 = vpop.f32.mrf.mxu0 }
 0x4de   : > { %v4019_v36 = vpop.f32.mrf.mxu1 }
 0x4e7   : > { %v4023_v21 = vpop.f32.mrf.mxu1 }
 0x4ec   : > { %v4017_v33 = vpop.f32.mrf.mxu2 }
 0x4f4   : > { %v1400_v32 = vpop.f32.mrf.mxu0  ;;  %v4025_v19 = vpop.f32.mrf.mxu3 }
 0x4f5   : > { %v1529_v41 = vmul.f32 0.35355338, %v1400_v32  ;;  %v4021_v24 = vpop.f32.mrf.mxu2 }
 0x4f7   : > { %v1540_v51 = vadd.f32 %v1538_v57, %v1529_v41 }
 0x4f9   : > { %v4006_v6 = vadd.f32 %v4003_v23, %v1540_v51 }
 0x4fb   : > { %v1556_v7 = vsel %vm493_vm1, %v4006_v6, -inf }
 0x4fc   : > { %1557 = vmax.xlane.f32.xlu0 %v1556_v7  ;;  %v1403_v37 = vpop.f32.mrf.mxu0 }
 0x4fd   : > { %v1530_v38 = vmul.f32 0.35355338, %v1403_v37  ;;  %v1482_v40 = vpop.f32.mrf.mxu2 }
 0x4fe   : > { %v1533_v47 = vmul.f32 0.35355338, %v1482_v40 }
 0x4ff   : > { %v1541_v27 = vadd.f32 %v1539_v25, %v1530_v38  ;;  %v4064_v38 = vld [vmem:[#allocation7 + $0x38] sm:$0xff] }
 0x500   : > { %v1544_v62 = vadd.f32 %v1538_v57, %v1533_v47  ;;  %v3012_v47 = vpack.i.bf16 %v3932_v44, %v3939_v45  ;;  %v4101_v44 = vpack.i.bf16 %v3949_v46, %v3944_v9  ;;  %v4104_v45 = vld [vmem:[%s3563_s7 + $0x38] sm:$0xff] }
 0x501   : > { %v4013_v12 = vadd.f32 %v4010_v29, %v1541_v27 }
 0x502   : > { %v4039_v42 = vadd.f32 %v4036_v63, %v1544_v62  ;;  %v4086_v62 = vld [vmem:[%s3563_s7 + $0x20] sm:$0xff] }
 0x503   : > { %v1559_v35 = vsel %vm493_vm1, %v4013_v12, -inf }
 0x504   : > { %1560 = vmax.xlane.f32.xlu1 %v1559_v35  ;;  %v1568_v2 = vsel %vm493_vm1, %v4039_v42, -inf  ;;  %v3009_v35 = vpop.permute.xlu2 %3008 }
 0x505   : > { %v1485_v30 = vpop.f32.mrf.mxu2  ;;  %v3010_v40 = vunpack.i.l.bf16 %v3009_v35 }
 0x506   : > { %v1534_v5 = vmul.f32 0.35355338, %v1485_v30 }
 0x507   : > { %1844 = vmatpush.msrb.mxu2 %v3010_v40 }
 0x508   : > { %v1545_v43 = vadd.f32 %v1539_v25, %v1534_v5 }
 0x50a   : > { %v4053_v11 = vadd.f32 %v4050_v55, %v1545_v43 }
 0x50c   : > { %v1571_v32 = vsel %vm493_vm1, %v4053_v11, -inf }
 0x52c   : > { %v1441_v28 = vpop.f32.mrf.mxu1 }
 0x52d   : > { %v1531_v15 = vmul.f32 0.35355338, %v1441_v28  ;;  %v3011_v28 = vunpack.i.h.bf16 %v3009_v35 }
 0x52f   : > { %v1542_v48 = vadd.f32 %v1538_v57, %v1531_v15  ;;  %1845 = vmatpush.msrb.mxu2 %v3011_v28  ;;  %v4074_v15 = vld [vmem:[%s3563_s7 + $0x28] sm:$0xff] }
 0x531   : > { %v4030_v50 = vadd.f32 %v4027_v1, %v1542_v48  ;;  %v4083_v48 = vld [vmem:[%s3563_s7 + $0x8] sm:$0xff] }
 0x533   : > { %v1562_v49 = vsel %vm493_vm1, %v4030_v50, -inf }
 0x534   : > { %1563 = vmax.xlane.f32.xlu2 %v1562_v49  ;;  %v1444_v31 = vpop.f32.mrf.mxu1 }
 0x535   : > { %v1532_v52 = vmul.f32 0.35355338, %v1444_v31  ;;  %v4034_v54 = vpop.f32.mrf.mxu3 }
 0x537   : > { %v1543_v3 = vadd.f32 %v1539_v25, %v1532_v52 }
 0x539   : > { %v4044_v56 = vadd.f32 %v4041_v0, %v1543_v3 }
 0x53b   : > { %v1565_v18 = vsel %vm493_vm1, %v4044_v56, -inf }
 0x53c   : > { %1569 = vmax.xlane.f32.xlu2 %v1568_v2  ;;  %1566 = vmax.xlane.f32.xlu1 %v1565_v18 }
 0x53d   : > { %v1523_v53 = vpop.f32.mrf.mxu3 }
 0x53e   : > { %v1535_v4 = vmul.f32 0.35355338, %v1523_v53 }
 0x540   : > { %v1546_v58 = vadd.f32 %v1538_v57, %v1535_v4 }
 0x542   : > { %v4058_v20 = vadd.f32 %v4055_v14, %v1546_v58 }
 0x544   : > { %1572 = vmax.xlane.f32.xlu1 %v1571_v32  ;;  %v1574_v41 = vsel %vm493_vm1, %v4058_v20, -inf }
 0x545   : > { %1575 = vmax.xlane.f32.xlu2 %v1574_v41  ;;  %v1526_v51 = vpop.f32.mrf.mxu3 }
 0x546   : > { %v1536_v7 = vmul.f32 0.35355338, %v1526_v51 }
 0x548   : > { %v1547_v37 = vadd.f32 %v1539_v25, %v1536_v7  ;;  %v3017_v25 = vpack.i.bf16 %v3927_v34, %v3964_v16  ;;  %v4093_v34 = vld [vmem:[%s3563_s7] sm:$0xff]  ;;  %v4111_v16 = vld [vmem:[%s3563_s7 + $0x30] sm:$0xff]  ;;  %s3404_s7 = smov 24  }
 0x54a   : > { %v4067_v57 = vadd.f32 %v4064_v38, %v1547_v37 }
 0x54c   : > { %v1577_v27 = vsel %vm493_vm1, %v4067_v57, -inf }
 0x54d   : > { %1578 = vmax.xlane.f32.xlu0 %v1577_v27 }
 0x55d   : > { %1986 = vrot.lane.b32.xlu1 %v4074_v15, %s3399_s10  ;;  %3018 = vrot.lane.b32.xlu2 %v3017_v25, %s3398_s13 }
 0x561   : > { %3013 = vrot.lane.b32.xlu0 %v3012_v47, %s3398_s13 }
 0x565   : > { %1904 = vrot.lane.b32.xlu1 %v4083_v48, %s3399_s10  ;;  %1984 = vrot.lane.b32.xlu2 %v4086_v62, %s3399_s10 }
 0x56d   : > { %1902 = vrot.lane.b32.xlu1 %v4093_v34, %s3399_s10  ;;  %1980 = vrot.lane.b32.xlu2 %v4086_v62, %s3400_s14 }
 0x56f   : > { %v1558_v49 = vpop.xlane.xlu0 %1557 }
 0x570   : > { %v1580_v30 = vsub.f32 %v4006_v6, %v1558_v49 }
 0x572   : > { %v1588_v31 = vmul.f32 1.442695, %v1580_v30 }
 0x574   : > { %3112 = vpow2.f32 %v1588_v31 }
 0x575   : > { %2027 = vrot.lane.b32.xlu1 %v4104_v45, %s3399_s10  ;;  %3023 = vrot.lane.b32.xlu2 %v4101_v44, %s3398_s13  ;;  %s2634_s13 = sshll.u32 %s2631_s26, 4  ;;  %s2635_s13 = int_to_ptr.hbm [resolvable:$true] %s2634_s13 }
 0x577   : > { %v1561_v52 = vpop.xlane.xlu1 %1560 }
 0x578   : > { %v1581_v5 = vsub.f32 %v4013_v12, %v1561_v52 }
 0x57a   : > { %v1590_v3 = vmul.f32 1.442695, %v1581_v5  ;;  %v4121_v43 = vpop.eup %3112 }
 0x57b   : > { %v1604_v2 = vsel %vm493_vm1, %v4121_v43, 0.0 }
 0x57c   : > { %3114 = vpow2.f32 %v1590_v3 }
 0x57d   : > { %2025 = vrot.lane.b32.xlu1 %v4111_v16, %s3399_s10  ;;  %1982 = vrot.lane.b32.xlu2 %v4074_v15, %s3400_s14 }
 0x582   : > { %v4126_v58 = vpop.eup %3114 }
 0x583   : > { %v1607_v6 = vsel %vm493_vm1, %v4126_v58, 0.0 }
 0x585   : > { %1898 = vrot.lane.b32.xlu2 %v4093_v34, %s3400_s14 }
 0x5a7   : > { %v1564_v18 = vpop.xlane.xlu2 %1563  ;;  %1605 = vadd.xlane.f32.xlu1 %v1604_v2 }
 0x5a8   : > { %v1582_v53 = vsub.f32 %v4030_v50, %v1564_v18 }
 0x5aa   : > { %v1592_v4 = vmul.f32 1.442695, %v1582_v53 }
 0x5ac   : > { %3116 = vpow2.f32 %v1592_v4 }
 0x5af   : > { %v1570_v32 = vpop.xlane.xlu2 %1569  ;;  %1608 = vadd.xlane.f32.xlu1 %v1607_v6  ;;  %v1567_v12 = vpop.xlane.xlu1 %1566 }
 0x5b0   : > { %v1583_v41 = vsub.f32 %v4044_v56, %v1567_v12  ;;  %v1584_v37 = vsub.f32 %v4039_v42, %v1570_v32 }
 0x5b2   : > { %v1594_v51 = vmul.f32 1.442695, %v1583_v41  ;;  %v4131_v7 = vpop.eup %3116  ;;  %v1596_v27 = vmul.f32 1.442695, %v1584_v37 }
 0x5b3   : > { %v1610_v50 = vsel %vm493_vm1, %v4131_v7, 0.0 }
 0x5b4   : > { %3118 = vpow2.f32 %v1594_v51 }
 0x5b5   : > { %3120 = vpow2.f32 %v1596_v27 }
 0x5b7   : > { %1611 = vadd.xlane.f32.xlu1 %v1610_v50  ;;  %v1573_v35 = vpop.xlane.xlu1 %1572 }
 0x5b8   : > { %v1585_v40 = vsub.f32 %v4053_v11, %v1573_v35  ;;  %v1576_v28 = vpop.xlane.xlu2 %1575 }
 0x5b9   : > { %v1586_v56 = vsub.f32 %v4058_v20, %v1576_v28 }
 0x5ba   : > { %v1598_v25 = vmul.f32 1.442695, %v1585_v40  ;;  %v4137_v47 = vpop.eup %3118 }
 0x5bb   : > { %v1613_v42 = vsel %vm493_vm1, %v4137_v47, 0.0  ;;  %v1600_v49 = vmul.f32 1.442695, %v1586_v56  ;;  %v4142_v52 = vpop.eup %3120 }
 0x5bc   : > { %3122 = vpow2.f32 %v1598_v25  ;;  %1614 = vadd.xlane.f32.xlu0 %v1613_v42  ;;  %v1616_v18 = vsel %vm493_vm1, %v4142_v52, 0.0 }
 0x5bd   : > { %3124 = vpow2.f32 %v1600_v49 }
 0x5c0   : > { %v1579_v30 = vpop.xlane.xlu0 %1578  ;;  %v3019_v31 = vpop.permute.xlu2 %3018 }
 0x5c1   : > { %v3021_v5 = vunpack.i.h.bf16 %v3019_v31  ;;  %v3020_v3 = vunpack.i.l.bf16 %v3019_v31  ;;  %v1587_v2 = vsub.f32 %v4067_v57, %v1579_v30 }
 0x5c2   : > { %v4144_v11 = vpop.eup %3122 }
 0x5c3   : > { %v1619_v20 = vsel %vm493_vm1, %v4144_v11, 0.0  ;;  %1879 = vmatpush.msra.mxu3 %v3020_v3  ;;  %v1602_v53 = vmul.f32 1.442695, %v1587_v2  ;;  %v4151_v6 = vpop.eup %3124 }
 0x5c4   : > { %1620 = vadd.xlane.f32.xlu2 %v1619_v20  ;;  %1617 = vadd.xlane.f32.xlu0 %v1616_v18  ;;  %v1622_v32 = vsel %vm493_vm1, %v4151_v6, 0.0 }
 0x5c5   : > { %1880 = vmatpush.msra.mxu3 %v3021_v5  ;;  %3126 = vpow2.f32 %v1602_v53 }
 0x5c8   : > { %v1985_v4 = vpop.permute.xlu2 %1984 }
 0x5cb   : > { %v4160_v41 = vpop.eup %3126 }
 0x5cc   : > { %1623 = vadd.xlane.f32.xlu0 %v1622_v32  ;;  %v1625_v37 = vsel %vm493_vm1, %v4160_v41, 0.0 }
 0x5cf   : > { %v1987_v57 = vpop.permute.xlu1 %1986 }
 0x5d0   : > { %2833 = vmatpush.xpose.msk.msra.mxu2 %vm324_vm0, %v1987_v57  ;;  %v4156_v12 = vpop.permute.xlu2 %1980  ;;  %1945 = vrot.lane.b32.xlu1 %v3944_v9, %s3399_s10 }
 0x5d3   : > { %v3014_v51 = vpop.permute.xlu0 %3013 }
 0x5d4   : > { %2834 = vmatpush.xpose.msk.msra.mxu2 %vm324_vm0, %v1985_v4  ;;  %v3016_v50 = vunpack.i.h.bf16 %v3014_v51  ;;  %v3015_v27 = vunpack.i.l.bf16 %v3014_v51  ;;  %1626 = vadd.xlane.f32.xlu0 %v1625_v37 }
 0x5d6   : > { %1774 = vmatpush.msra.mxu0 %v3015_v27 }
 0x5d7   : > { %v1905_v35 = vpop.permute.xlu1 %1904 }
 0x5d8   : > { %v3024_v40 = vpop.permute.xlu2 %3023  ;;  %2023 = vrot.lane.b32.xlu1 %v4104_v45, %s3400_s14  ;;  %1775 = vmatpush.msra.mxu0 %v3016_v50 }
 0x5d9   : > { %v3026_v28 = vunpack.i.h.bf16 %v3024_v40  ;;  %v3025_v25 = vunpack.i.l.bf16 %v3024_v40 }
 0x5da   : > { %2825 = vmatpush.xpose.msk.msrb.mxu0 %vm324_vm0, %v1905_v35 }
 0x5db   : > { %1809 = vmatpush.msra.mxu1 %v3025_v25 }
 0x5dc   : > { %2021 = vrot.lane.b32.xlu2 %v4111_v16, %s3400_s14 }
 0x5dd   : > { %1810 = vmatpush.msra.mxu1 %v3026_v28 }
 0x5df   : > { %v1903_v56 = vpop.permute.xlu1 %1902 }
 0x5e0   : > { %1941 = vrot.lane.b32.xlu1 %v3944_v9, %s3400_s14  ;;  %2826 = vmatpush.xpose.msk.msrb.mxu0 %vm324_vm0, %v1903_v56  ;;  %v4181_v2 = vpop.permute.xlu2 %1982 }
 0x5e4   : > { %1943 = vrot.lane.b32.xlu2 %v3949_v46, %s3399_s10  ;;  %s2619_s10 = scalar_lea.sflag [#allocation4], %s3557_s17 }
 0x5e7   : > { %v2028_v42 = vpop.permute.xlu1 %2027 }
 0x5e8   : > { %2837 = vmatpush.xpose.msk.msrb.mxu3 %vm324_vm0, %v2028_v42  ;;  %1900 = vrot.lane.b32.xlu0 %v4083_v48, %s3400_s14  ;;  %v1899_v56 = vpop.permute.xlu2 %1898 }
 0x5ec   : > { %1939 = vrot.lane.b32.xlu2 %v3949_v46, %s3400_s14  ;;  %s3324_s14 = sshra.s32 %s2635_s13, 4  ;;  %s3325_s14 = int_to_ptr.hbm [resolvable:$true] %s3324_s14 }
 0x5ed   : > { %p3331_p11 = scmp.lt.s32.totalorder %s3325_s14, %s4485_s5 }
 0x5ef   : > { %v2026_v49 = vpop.permute.xlu1 %2025 }
 0x5f0   : > { %2838 = vmatpush.xpose.msk.msrb.mxu3 %vm324_vm0, %v2026_v49 }
 0x61a   : > { %v1606_v30 = vpop.xlane.xlu1 %1605 }
 0x61b   : > { %3128 = vrcp.f32 %v1606_v30  ;;  %v1639_v20 = vand.u32 2147483648, %v1606_v30  ;;  %v1637_v53 = vand.u32 2147483647, %v1606_v30  ;;  %vm1633_vm11 = vweird.f32 %v1606_v30 }
 0x61d   : > { %v1640_v46 = vor.u32 1.1754944e-38, %v1639_v20  ;;  %vm1638_vm13 = vcmp.eq.f32.partialorder %v1637_v53, 8.507059e+37 }
 0x621   : > { %v3129_v9 = vpop.eup %3128 }
 0x622   : > { %v1629_v31 = vmul.f32 %v3129_v9, %v1606_v30  ;;  %v1609_v5 = vpop.xlane.xlu1 %1608  ;;  %vm1634_vm10 = vweird.f32 %v3129_v9 }
 0x623   : > { %3130 = vrcp.f32 %v1609_v5  ;;  %vm1635_vm12 = vmor %vm1633_vm11, %vm1634_vm10  ;;  %v1653_v40 = vand.u32 2147483648, %v1609_v5  ;;  %v1651_v25 = vand.u32 2147483647, %v1609_v5  ;;  %vm1647_vm15 = vweird.f32 %v1609_v5 }
 0x624   : > { %v1630_v3 = vsub.f32 1.0, %v1629_v31 }
 0x625   : > { %vm1652_vm3 = vcmp.eq.f32.partialorder %v1651_v25, 8.507059e+37 }
 0x626   : > { %v1631_v18 = vmul.f32 %v3129_v9, %v1630_v3 }
 0x628   : > { %v1632_v4 = vadd.f32 %v3129_v9, %v1631_v18 }
 0x629   : > { %v3131_v32 = vpop.eup %3130 }
 0x62a   : > { %v1636_v57 = vsel %vm1635_vm12, %v3129_v9, %v1632_v4  ;;  %v1643_v51 = vmul.f32 %v3131_v32, %v1609_v5  ;;  %v1612_v37 = vpop.xlane.xlu1 %1611  ;;  %vm1648_vm14 = vweird.f32 %v3131_v32  ;;  %v1654_v9 = vor.u32 1.1754944e-38, %v1653_v40 }
 0x62b   : > { %v1641_v50 = vsel %vm1638_vm13, %v1640_v46, %v1636_v57  ;;  %3132 = vrcp.f32 %v1612_v37  ;;  %vm1649_vm2 = vmor %vm1647_vm15, %vm1648_vm14  ;;  %v1667_v53 = vand.u32 2147483648, %v1612_v37  ;;  %v1665_v46 = vand.u32 2147483647, %v1612_v37 }
 0x62c   : > { %v1644_v27 = vsub.f32 1.0, %v1643_v51  ;;  %v1740_v35 = vmul.f32 %v4121_v43, %v1641_v50  ;;  %vm1661_vm5 = vweird.f32 %v1612_v37 }
 0x62d   : > { %vm1666_vm7 = vcmp.eq.f32.partialorder %v1665_v46, 8.507059e+37 }
 0x62e   : > { %v1645_v28 = vmul.f32 %v3131_v32, %v1644_v27  ;;  %2817 = vmatmul.msk.f32.vlgmr.msra.gmra.mxu0 %vm493_vm1, %v1740_v35 }
 0x62f   : > { %v1615_v42 = vpop.xlane.xlu0 %1614 }
 0x630   : > { %v1646_v49 = vadd.f32 %v3131_v32, %v1645_v28  ;;  %3134 = vrcp.f32 %v1615_v42  ;;  %v1681_v25 = vand.u32 2147483648, %v1615_v42  ;;  %vm1675_vm9 = vweird.f32 %v1615_v42 }
 0x631   : > { %v3133_v30 = vpop.eup %3132 }
 0x632   : > { %v1657_v31 = vmul.f32 %v3133_v30, %v1612_v37  ;;  %v1650_v3 = vsel %vm1649_vm2, %v3131_v32, %v1646_v49  ;;  %vm1662_vm4 = vweird.f32 %v3133_v30  ;;  %v1668_v32 = vor.u32 1.1754944e-38, %v1667_v53 }
 0x633   : > { %v1655_v20 = vsel %vm1652_vm3, %v1654_v9, %v1650_v3  ;;  %vm1663_vm6 = vmor %vm1661_vm5, %vm1662_vm4  ;;  %v1679_v9 = vand.u32 2147483647, %v1615_v42 }
 0x634   : > { %v1658_v18 = vsub.f32 1.0, %v1657_v31  ;;  %v1741_v43 = vmul.f32 %v4126_v58, %v1655_v20 }
 0x635   : > { %vm1680_vm11 = vcmp.eq.f32.partialorder %v1679_v9, 8.507059e+37 }
 0x636   : > { %v1659_v4 = vmul.f32 %v3133_v30, %v1658_v18  ;;  %2818 = vmatmul.msk.f32.gmra.mxu0 %vm493_vm1, %v1741_v43  ;;  %v3135_v5 = vpop.eup %3134  ;;  %v1682_v18 = vor.u32 1.1754944e-38, %v1681_v25 }
 0x637   : > { %v4187_v57 = vpop.xlane.xlu2 %1620  ;;  %v1671_v50 = vmul.f32 %v3135_v5, %v1615_v42  ;;  %v1618_v27 = vpop.xlane.xlu0 %1617  ;;  %vm1676_vm8 = vweird.f32 %v3135_v5 }
 0x638   : > { %v1660_v51 = vadd.f32 %v3133_v30, %v1659_v4  ;;  %3136 = vrcp.f32 %v4187_v57  ;;  %vm1677_vm10 = vmor %vm1675_vm9, %vm1676_vm8  ;;  %vm1689_vm13 = vweird.f32 %v1618_v27  ;;  %vm1703_vm3 = vweird.f32 %v4187_v57 }
 0x639   : > { %3138 = vrcp.f32 %v1618_v27  ;;  %v1672_v58 = vsub.f32 1.0, %v1671_v50  ;;  %v1693_v50 = vand.u32 2147483647, %v1618_v27 }
 0x63a   : > { %v1664_v35 = vsel %vm1663_vm6, %v3133_v30, %v1660_v51 }
 0x63b   : > { %v1669_v40 = vsel %vm1666_vm7, %v1668_v32, %v1664_v35  ;;  %v1673_v28 = vmul.f32 %v3135_v5, %v1672_v58  ;;  %vm1694_vm15 = vcmp.eq.f32.partialorder %v1693_v50, 8.507059e+37 }
 0x63c   : > { %v1742_v49 = vmul.f32 %v4131_v7, %v1669_v40 }
 0x63d   : > { %v1674_v37 = vadd.f32 %v3135_v5, %v1673_v28 }
 0x63e   : > { %v4191_v31 = vpop.eup %3136  ;;  %2819 = vmatmul.msk.f32.vlgmr.msra.gmra.mxu1 %vm493_vm1, %v1742_v49  ;;  %2827 = vmatmul.msk.f32.vlgmr.msrb.gmra.mxu0 %vm324_vm0, %v1899_v56  ;;  %v1695_v56 = vand.u32 2147483648, %v1618_v27 }
 0x63f   : > { %v3139_v3 = vpop.eup %3138  ;;  %v1699_v30 = vmul.f32 %v4191_v31, %v4187_v57  ;;  %v4197_v20 = vpop.permute.xlu2 %2021  ;;  %v1678_v53 = vsel %vm1677_vm10, %v3135_v5, %v1674_v37  ;;  %vm1704_vm2 = vweird.f32 %v4191_v31 }
 0x640   : > { %v1685_v43 = vmul.f32 %v3139_v3, %v1618_v27  ;;  %v1624_v7 = vpop.xlane.xlu0 %1623  ;;  %v1683_v46 = vsel %vm1680_vm11, %v1682_v18, %v1678_v53  ;;  %vm1690_vm12 = vweird.f32 %v3139_v3  ;;  %v1696_v28 = vor.u32 1.1754944e-38, %v1695_v56  ;;  %vm1705_vm4 = vmor %vm1703_vm3, %vm1704_vm2 }
 0x641   : > { %v1700_v4 = vsub.f32 1.0, %v1699_v30  ;;  %3140 = vrcp.f32 %v1624_v7  ;;  %v1743_v58 = vmul.f32 %v4137_v47, %v1683_v46  ;;  %vm1691_vm14 = vmor %vm1689_vm13, %vm1690_vm12  ;;  %v1709_v47 = vand.u32 2147483648, %v4187_v57 }
 0x642   : > { %v1686_v42 = vsub.f32 1.0, %v1685_v43  ;;  %v1946_v51 = vpop.permute.xlu1 %1945  ;;  %v1707_v53 = vand.u32 2147483647, %v4187_v57  ;;  %v1721_v46 = vand.u32 2147483647, %v1624_v7  ;;  %vm1717_vm6 = vweird.f32 %v1624_v7 }
 0x643   : > { %2829 = vmatpush.xpose.msk.msrb.mxu1 %vm324_vm0, %v1946_v51  ;;  %v1701_v35 = vmul.f32 %v4191_v31, %v1700_v4  ;;  %v1710_v50 = vor.u32 1.1754944e-38, %v1709_v47 }
 0x644   : > { %v1687_v32 = vmul.f32 %v3139_v3, %v1686_v42  ;;  %vm1708_vm7 = vcmp.eq.f32.partialorder %v1707_v53, 8.507059e+37  ;;  %vm1722_vm9 = vcmp.eq.f32.partialorder %v1721_v46, 8.507059e+37 }
 0x645   : > { %v1702_v30 = vadd.f32 %v4191_v31, %v1701_v35 }
 0x646   : > { %v1688_v40 = vadd.f32 %v3139_v3, %v1687_v32  ;;  %2820 = vmatmul.msk.f32.gmra.mxu1 %vm493_vm1, %v1743_v58 }
 0x647   : > { %v3141_v5 = vpop.eup %3140  ;;  %v1944_v25 = vpop.permute.xlu2 %1943  ;;  %v1706_v51 = vsel %vm1705_vm4, %v4191_v31, %v1702_v30 }
 0x648   : > { %v1692_v49 = vsel %vm1691_vm14, %v3139_v3, %v1688_v40  ;;  %v1713_v9 = vmul.f32 %v3141_v5, %v1624_v7  ;;  %v1627_v37 = vpop.xlane.xlu0 %1626  ;;  %2830 = vmatpush.xpose.msk.msrb.mxu1 %vm324_vm0, %v1944_v25  ;;  %v1723_v3 = vand.u32 2147483648, %v1624_v7  ;;  %vm1718_vm5 = vweird.f32 %v3141_v5 }
 0x649   : > { %v1697_v18 = vsel %vm1694_vm15, %v1696_v28, %v1692_v49  ;;  %3142 = vrcp.f32 %v1627_v37  ;;  %vm1719_vm8 = vmor %vm1717_vm6, %vm1718_vm5  ;;  %v1735_v7 = vand.u32 2147483647, %v1627_v37  ;;  %vm1731_vm11 = vweird.f32 %v1627_v37 }
 0x64a   : > { %v1714_v27 = vsub.f32 1.0, %v1713_v9  ;;  %v1744_v43 = vmul.f32 %v4142_v52, %v1697_v18  ;;  %v2024_v4 = vpop.permute.xlu1 %2023  ;;  %v1724_v35 = vor.u32 1.1754944e-38, %v1723_v3  ;;  %v1711_v52 = vsel %vm1708_vm7, %v1710_v50, %v1706_v51  ;;  %v2069_v3 = vld [vmem:[#allocation5 + $0x30] sm:$0xff] }
 0x64b   : > { %v1745_v49 = vmul.f32 %v4144_v11, %v1711_v52  ;;  %v1737_v9 = vand.u32 2147483648, %v1627_v37  ;;  %vm1736_vm13 = vcmp.eq.f32.partialorder %v1735_v7, 8.507059e+37 }
 0x64c   : > { %v1715_v42 = vmul.f32 %v3141_v5, %v1714_v27  ;;  %2821 = vmatmul.msk.f32.vlgmr.msrb.gmra.mxu2 %vm493_vm1, %v1744_v43 }
 0x64d   : > { %v1738_v47 = vor.u32 1.1754944e-38, %v1737_v9 }
 0x64e   : > { %v1716_v56 = vadd.f32 %v3141_v5, %v1715_v42 }
 0x64f   : > { %v3143_v32 = vpop.eup %3142  ;;  %v1940_v58 = vpop.permute.xlu2 %1939 }
 0x650   : > { %v1720_v57 = vsel %vm1719_vm8, %v3141_v5, %v1716_v56  ;;  %v1727_v40 = vmul.f32 %v3143_v32, %v1627_v37  ;;  %2831 = vmatmul.msk.f32.vlgmr.msrb.gmra.mxu1 %vm324_vm0, %v1940_v58  ;;  %vm1732_vm10 = vweird.f32 %v3143_v32 }
 0x651   : > { %v1725_v28 = vsel %vm1722_vm9, %v1724_v35, %v1720_v57  ;;  %vm1733_vm12 = vmor %vm1731_vm11, %vm1732_vm10  ;;  %v2070_v35 = vld [vmem:[#allocation5 + $0x38] sm:$0xff] }
 0x652   : > { %v1728_v25 = vsub.f32 1.0, %v1727_v40  ;;  %v1746_v31 = vmul.f32 %v4151_v6, %v1725_v28  ;;  %v1942_v18 = vpop.permute.xlu1 %1941 }
 0x654   : > { %v1729_v30 = vmul.f32 %v3143_v32, %v1728_v25  ;;  %2822 = vmatmul.msk.f32.gmra.mxu2 %vm493_vm1, %v1745_v49  ;;  %2823 = vmatmul.msk.f32.vlgmr.msra.gmra.mxu3 %vm493_vm1, %v1746_v31 }
 0x656   : > { %v1730_v5 = vadd.f32 %v3143_v32, %v1729_v30 }
 0x658   : > { %v1734_v27 = vsel %vm1733_vm12, %v3143_v32, %v1730_v5  ;;  %2832 = vmatmul.msk.f32.gmra.mxu1 %vm324_vm0, %v1942_v18 }
 0x659   : > { %v1739_v11 = vsel %vm1736_vm13, %v1738_v47, %v1734_v27 }
 0x65a   : > { %v1747_v6 = vmul.f32 %v4160_v41, %v1739_v11  ;;  %v1901_v43 = vpop.permute.xlu0 %1900 }
 0x65b   : > { %2828 = vmatmul.msk.f32.gmra.mxu0 %vm324_vm0, %v1901_v43 }
 0x65c   : > { %2824 = vmatmul.msk.f32.gmra.mxu3 %vm493_vm1, %v1747_v6  ;;  %2835 = vmatmul.msk.f32.vlgmr.msra.gmra.mxu2 %vm324_vm0, %v4156_v12 }
 0x664   : > { %2839 = vmatmul.msk.f32.vlgmr.msrb.gmra.mxu3 %vm324_vm0, %v4197_v20  ;;  %2836 = vmatmul.msk.f32.gmra.mxu2 %vm324_vm0, %v4181_v2 }
 0x66c   : > { %2840 = vmatmul.msk.f32.gmra.mxu3 %vm324_vm0, %v2024_v4 }
 0x6ab   : > { %v4228_v37 = vpop.f32.mrf.mxu0 }
 0x6b3   : > { %v4230_v53 = vpop.f32.mrf.mxu0 }
 0x6bb   : > { %v1931_v41 = vpop.f32.mrf.mxu0  ;;  %v4234_v50 = vpop.f32.mrf.mxu1 }
 0x6bc   : > { %v2060_v42 = vmul.f32 0.35355338, %v1931_v41 }
 0x6be   : > { %v2071_v46 = vadd.f32 %v2069_v3, %v2060_v42 }
 0x6c0   : > { %v2079_v51 = vadd.f32 %v4003_v23, %v2071_v46 }
 0x6c2   : > { %v2087_v12 = vsel %vm493_vm1, %v2079_v51, -inf }
 0x6c3   : > { %2088 = vmax.xlane.f32.xlu2 %v2087_v12  ;;  %v4238_v2 = vpop.f32.mrf.mxu1 }
 0x6cd   : > { %v1972_v57 = vpop.f32.mrf.mxu1 }
 0x6ce   : > { %v2062_v27 = vmul.f32 0.35355338, %v1972_v57 }
 0x6cf   : > { %v4236_v20 = vpop.f32.mrf.mxu2 }
 0x6d0   : > { %v2073_v42 = vadd.f32 %v2069_v3, %v2062_v27 }
 0x6d2   : > { %v2081_v57 = vadd.f32 %v4027_v1, %v2073_v42 }
 0x6d5   : > { %v1975_v30 = vpop.f32.mrf.mxu1 }
 0x6d7   : > { %v4240_v4 = vpop.f32.mrf.mxu2  ;;  %v4242_v56 = vpop.f32.mrf.mxu3 }
 0x6d8   : > { %v1934_v32 = vpop.f32.mrf.mxu0 }
 0x6d9   : > { %v2061_v52 = vmul.f32 0.35355338, %v1934_v32 }
 0x6db   : > { %v2072_v58 = vadd.f32 %v2070_v35, %v2061_v52 }
 0x6dd   : > { %v2080_v23 = vadd.f32 %v4010_v29, %v2072_v58  ;;  %v2063_v29 = vmul.f32 0.35355338, %v1975_v30 }
 0x6df   : > { %v4245_v40 = vpop.f32.mrf.mxu3  ;;  %v2013_v28 = vpop.f32.mrf.mxu2  ;;  %v2090_v25 = vsel %vm493_vm1, %v2080_v23, -inf  ;;  %v2074_v12 = vadd.f32 %v2070_v35, %v2063_v29 }
 0x6e0   : > { %v2064_v49 = vmul.f32 0.35355338, %v2013_v28  ;;  %2091 = vmax.xlane.f32.xlu2 %v2090_v25 }
 0x6e1   : > { %v4256_v28 = vadd.f32 %v4041_v0, %v2074_v12 }
 0x6e2   : > { %v2075_v31 = vadd.f32 %v2069_v3, %v2064_v49 }
 0x6e4   : > { %v2083_v9 = vadd.f32 %v4036_v63, %v2075_v31 }
 0x6e6   : > { %v2099_v7 = vsel %vm493_vm1, %v2083_v9, -inf }
 0x6e7   : > { %v2054_v18 = vpop.f32.mrf.mxu3  ;;  %2100 = vmax.xlane.f32.xlu0 %v2099_v7  ;;  %v2016_v5 = vpop.f32.mrf.mxu2 }
 0x6e8   : > { %v2066_v47 = vmul.f32 0.35355338, %v2054_v18  ;;  %v2065_v11 = vmul.f32 0.35355338, %v2016_v5 }
 0x6ea   : > { %v2077_v6 = vadd.f32 %v2069_v3, %v2066_v47  ;;  %v2076_v43 = vadd.f32 %v2070_v35, %v2065_v11  ;;  %v2093_v3 = vsel %vm493_vm1, %v2081_v57, -inf }
 0x6ec   : > { %v2085_v41 = vadd.f32 %v4055_v14, %v2077_v6  ;;  %v2084_v46 = vadd.f32 %v4050_v55, %v2076_v43  ;;  %v2096_v55 = vsel %vm493_vm1, %v4256_v28, -inf }
 0x6ee   : > { %v2105_v63 = vsel %vm493_vm1, %v2085_v41, -inf  ;;  %v2102_v32 = vsel %vm493_vm1, %v2084_v46, -inf }
 0x6ef   : > { %v2057_v52 = vpop.f32.mrf.mxu3  ;;  %2103 = vmax.xlane.f32.xlu1 %v2102_v32  ;;  %2106 = vmax.xlane.f32.xlu0 %v2105_v63 }
 0x6f0   : > { %v2067_v58 = vmul.f32 0.35355338, %v2057_v52 }
 0x6f2   : > { %v2078_v25 = vadd.f32 %v2070_v35, %v2067_v58 }
 0x6f4   : > { %v2086_v14 = vadd.f32 %v4064_v38, %v2078_v25 }
 0x6f6   : > { %v2108_v49 = vsel %vm493_vm1, %v2086_v14, -inf }
 0x6f7   : > { %2109 = vmax.xlane.f32.xlu2 %v2108_v49  ;;  %2094 = vmax.xlane.f32.xlu1 %v2093_v3 }
 0x6f8   : > { %2097 = vmax.xlane.f32.xlu0 %v2096_v55 }
 0x736   : > { %v2089_v31 = vpop.xlane.xlu2 %2088 }
 0x737   : > { %v2111_v30 = vsub.f32 %v2079_v51, %v2089_v31 }
 0x739   : > { %v2119_v7 = vmul.f32 1.442695, %v2111_v30 }
 0x73b   : > { %3144 = vpow2.f32 %v2119_v7 }
 0x741   : > { %v4263_v1 = vpop.eup %3144 }
 0x742   : > { %v2135_v0 = vsel %vm493_vm1, %v4263_v1, 0.0 }
 0x743   : > { %2136 = vadd.xlane.f32.xlu2 %v2135_v0  ;;  %v3027_v0 = vpack.i.bf16 %v4086_v62, %v4074_v15 }
 0x753   : > { %v2092_v38 = vpop.xlane.xlu2 %2091 }
 0x754   : > { %v2112_v35 = vsub.f32 %v2080_v23, %v2092_v38  ;;  %v3032_v38 = vpack.i.bf16 %v4093_v34, %v4083_v48 }
 0x756   : > { %v2121_v18 = vmul.f32 1.442695, %v2112_v35  ;;  %v3037_v35 = vpack.i.bf16 %v4111_v16, %v4104_v45 }
 0x758   : > { %3146 = vpow2.f32 %v2121_v18 }
 0x75a   : > { %v2101_v5 = vpop.xlane.xlu0 %2100 }
 0x75b   : > { %v2115_v47 = vsub.f32 %v2083_v9, %v2101_v5 }
 0x75d   : > { %v2127_v27 = vmul.f32 1.442695, %v2115_v47 }
 0x75e   : > { %v4267_v11 = vpop.eup %3146 }
 0x75f   : > { %3148 = vpow2.f32 %v2127_v27  ;;  %v2138_v51 = vsel %vm493_vm1, %v4267_v11, 0.0 }
 0x760   : > { %2139 = vadd.xlane.f32.xlu1 %v2138_v51 }
 0x762   : > { %v2107_v29 = vpop.xlane.xlu0 %2106  ;;  %v2104_v6 = vpop.xlane.xlu1 %2103 }
 0x763   : > { %v2117_v43 = vsub.f32 %v2085_v41, %v2107_v29  ;;  %v2116_v42 = vsub.f32 %v2084_v46, %v2104_v6 }
 0x765   : > { %v4271_v12 = vpop.eup %3148  ;;  %v2131_v63 = vmul.f32 1.442695, %v2117_v43  ;;  %v2129_v23 = vmul.f32 1.442695, %v2116_v42 }
 0x766   : > { %v2147_v9 = vsel %vm493_vm1, %v4271_v12, 0.0 }
 0x767   : > { %3150 = vpow2.f32 %v2131_v63 }
 0x768   : > { %3152 = vpow2.f32 %v2129_v23  ;;  %2148 = vadd.xlane.f32.xlu1 %v2147_v9 }
 0x76a   : > { %v2095_v32 = vpop.xlane.xlu1 %2094  ;;  %v2110_v52 = vpop.xlane.xlu2 %2109 }
 0x76b   : > { %v2113_v58 = vsub.f32 %v2081_v57, %v2095_v32  ;;  %v2118_v41 = vsub.f32 %v2086_v14, %v2110_v52  ;;  %v2098_v18 = vpop.xlane.xlu0 %2097 }
 0x76c   : > { %v2114_v5 = vsub.f32 %v4256_v28, %v2098_v18 }
 0x76d   : > { %v4275_v25 = vpop.eup %3150  ;;  %v2123_v3 = vmul.f32 1.442695, %v2113_v58  ;;  %v2133_v31 = vmul.f32 1.442695, %v2118_v41 }
 0x76e   : > { %v4277_v55 = vpop.eup %3152  ;;  %v2153_v46 = vsel %vm493_vm1, %v4275_v25, 0.0  ;;  %v2125_v15 = vmul.f32 1.442695, %v2114_v5 }
 0x76f   : > { %2154 = vadd.xlane.f32.xlu2 %v2153_v46  ;;  %v2150_v49 = vsel %vm493_vm1, %v4277_v55, 0.0  ;;  %3154 = vpow2.f32 %v2123_v3 }
 0x770   : > { %2151 = vadd.xlane.f32.xlu0 %v2150_v49  ;;  %3156 = vpow2.f32 %v2133_v31 }
 0x771   : > { %3158 = vpow2.f32 %v2125_v15 }
 0x775   : > { %v4283_v30 = vpop.eup %3154 }
 0x776   : > { %v2141_v57 = vsel %vm493_vm1, %v4283_v30, 0.0  ;;  %v4287_v7 = vpop.eup %3156 }
 0x777   : > { %2142 = vadd.xlane.f32.xlu1 %v2141_v57  ;;  %v2156_v14 = vsel %vm493_vm1, %v4287_v7, 0.0 }
 0x77f   : > { %2157 = vadd.xlane.f32.xlu1 %v2156_v14 }
 0x784   : > { %3028 = vrot.lane.b32.xlu0 %v3027_v0, %s3401_s15 }
 0x787   : > { %3033 = vrot.lane.b32.xlu2 %v3032_v38, %s3401_s15 }
 0x78f   : > { %3043 = vrot.lane.b32.xlu2 %v4101_v44, %s3401_s15 }
 0x797   : > { %2427 = vrot.lane.b32.xlu2 %v3996_v17, %s3402_s9  ;;  %v4309_v17 = vpop.eup %3158 }
 0x798   : > { %3038 = vrot.lane.b32.xlu1 %v3037_v35, %s3401_s15  ;;  %v2144_v48 = vsel %vm493_vm1, %v4309_v17, 0.0  ;;  %s3326_s15 = scalar_lea.hbm %s3325_s14, 64 }
 0x799   : > { %p3327_p1 = scmp.ne.s32.totalorder %s3325_s14, %s3326_s15 }
 0x79b   : > { %p3328_p4 = pnand %p3327_p1, %p3527_p3 }
 0x79d   : > { %p3329_p8 = pneg %p3328_p4 }
 0x79f   : > { %2461 = vrot.lane.b32.xlu2 %v4230_v53, %s3403_s30 }
 0x7a0   : > { %2459 = vrot.lane.b32.xlu1 %v4228_v37, %s3403_s30 }
 0x7a7   : > { %2469 = vrot.lane.b32.xlu2 %v4240_v4, %s3403_s30 }
 0x7a8   : > { %2429 = vrot.lane.b32.xlu1 %v4001_v13, %s3402_s9 }
 0x7ae   : > { %2145 = vadd.xlane.f32.xlu0 %v2144_v48 }
 0x7af   : > { %2431 = vrot.lane.b32.xlu2 %v4019_v36, %s3402_s9 }
 0x7b0   : > { %2463 = vrot.lane.b32.xlu1 %v4234_v50, %s3403_s30 }
 0x7b6   : > { %v2137_v13 = vpop.xlane.xlu2 %2136 }
 0x7b7   : > { %2439 = vrot.lane.b32.xlu2 %v4025_v19, %s3402_s9  ;;  %3160 = vrcp.f32 %v2137_v13  ;;  %v2170_v28 = vand.u32 2147483648, %v2137_v13  ;;  %vm2164_vm15 = vweird.f32 %v2137_v13  ;;  %v2168_v47 = vand.u32 2147483647, %v2137_v13 }
 0x7b8   : > { %2471 = vrot.lane.b32.xlu1 %v4242_v56, %s3403_s30 }
 0x7b9   : > { %v2171_v6 = vor.u32 1.1754944e-38, %v2170_v28  ;;  %vm2169_vm3 = vcmp.eq.f32.partialorder %v2168_v47, 8.507059e+37 }
 0x7bd   : > { %v3161_v34 = vpop.eup %3160 }
 0x7be   : > { %v2160_v36 = vmul.f32 %v3161_v34, %v2137_v13  ;;  %vm2165_vm14 = vweird.f32 %v3161_v34 }
 0x7bf   : > { %vm2166_vm2 = vmor %vm2164_vm15, %vm2165_vm14 }
 0x7c0   : > { %v2161_v45 = vsub.f32 1.0, %v2160_v36 }
 0x7c2   : > { %2437 = vrot.lane.b32.xlu0 %v4021_v24, %s3402_s9  ;;  %v2162_v19 = vmul.f32 %v3161_v34, %v2161_v45 }
 0x7c4   : > { %v2163_v56 = vadd.f32 %v3161_v34, %v2162_v19 }
 0x7c6   : > { %v2167_v51 = vsel %vm2166_vm2, %v3161_v34, %v2163_v56 }
 0x7c7   : > { %v2172_v63 = vsel %vm2169_vm3, %v2171_v6, %v2167_v51 }
 0x7c8   : > { %v2271_v46 = vmul.f32 %v4263_v1, %v2172_v63 }
 0x7ca   : > { %2433 = vrot.lane.b32.xlu0 %v4023_v21, %s3402_s9 }
 0x7d3   : > { %v2140_v62 = vpop.xlane.xlu1 %2139 }
 0x7d4   : > { %3162 = vrcp.f32 %v2140_v62  ;;  %v2184_v41 = vand.u32 2147483648, %v2140_v62  ;;  %vm2178_vm5 = vweird.f32 %v2140_v62  ;;  %v2182_v49 = vand.u32 2147483647, %v2140_v62 }
 0x7d6   : > { %v2185_v35 = vor.u32 1.1754944e-38, %v2184_v41  ;;  %vm2183_vm10 = vcmp.eq.f32.partialorder %v2182_v49, 8.507059e+37 }
 0x7da   : > { %v3163_v16 = vpop.eup %3162 }
 0x7db   : > { %v2149_v44 = vpop.xlane.xlu1 %2148  ;;  %v2174_v37 = vmul.f32 %v3163_v16, %v2140_v62  ;;  %vm2179_vm4 = vweird.f32 %v3163_v16 }
 0x7dc   : > { %3164 = vrcp.f32 %v2149_v44  ;;  %vm4338_vm7 = vmor %vm2178_vm5, %vm2179_vm4  ;;  %v2226_v14 = vand.u32 2147483648, %v2149_v44  ;;  %vm2220_vm8 = vweird.f32 %v2149_v44  ;;  %v2224_v1 = vand.u32 2147483647, %v2149_v44 }
 0x7dd   : > { %v2175_v21 = vsub.f32 1.0, %v2174_v37 }
 0x7de   : > { %v2227_v62 = vor.u32 1.1754944e-38, %v2226_v14  ;;  %vm2225_vm11 = vcmp.eq.f32.partialorder %v2224_v1, 8.507059e+37 }
 0x7df   : > { %v2176_v29 = vmul.f32 %v3163_v16, %v2175_v21 }
 0x7e1   : > { %v2177_v3 = vadd.f32 %v3163_v16, %v2176_v29 }
 0x7e2   : > { %v3165_v53 = vpop.eup %3164  ;;  %v4325_v50 = vpop.xlane.xlu2 %2154 }
 0x7e3   : > { %v2216_v4 = vmul.f32 %v3165_v53, %v2149_v44  ;;  %v4327_v24 = vpop.xlane.xlu0 %2151  ;;  %vm2221_vm6 = vweird.f32 %v3165_v53  ;;  %v2181_v38 = vsel %vm4338_vm7, %v3163_v16, %v2177_v3  ;;  %vm2248_vm7 = vweird.f32 %v4325_v50 }
 0x7e4   : > { %3166 = vrcp.f32 %v4327_v24  ;;  %vm2222_vm9 = vmor %vm2220_vm8, %vm2221_vm6  ;;  %v2186_v13 = vsel %vm2183_vm10, %v2185_v35, %v2181_v38  ;;  %vm2234_vm15 = vweird.f32 %v4327_v24 }
 0x7e5   : > { %v2217_v27 = vsub.f32 1.0, %v2216_v4 }
 0x7e7   : > { %v2218_v23 = vmul.f32 %v3165_v53, %v2217_v27  ;;  %v2240_v27 = vand.u32 2147483648, %v4327_v24 }
 0x7e9   : > { %v2219_v31 = vadd.f32 %v3165_v53, %v2218_v23  ;;  %v2238_v23 = vand.u32 2147483647, %v4327_v24  ;;  %v2241_v3 = vor.u32 1.1754944e-38, %v2240_v27 }
 0x7ea   : > { %v4330_v43 = vpop.eup %3166  ;;  %v3034_v42 = vpop.permute.xlu2 %3033 }
 0x7eb   : > { %v3036_v9 = vunpack.i.h.bf16 %v3034_v42  ;;  %v3035_v32 = vunpack.i.l.bf16 %v3034_v42  ;;  %v4332_v52 = vpop.xlane.xlu1 %2142  ;;  %v2230_v58 = vmul.f32 %v4330_v43, %v4327_v24  ;;  %v2223_v5 = vsel %vm2222_vm9, %v3165_v53, %v2219_v31 }
 0x7ec   : > { %3168 = vrcp.f32 %v4332_v52  ;;  %v2228_v4 = vsel %vm2225_vm11, %v2227_v62, %v2223_v5  ;;  %v2198_v44 = vand.u32 2147483648, %v4332_v52  ;;  %v2272_v53 = vmul.f32 %v4267_v11, %v2186_v13 }
 0x7ed   : > { %2305 = vmatpush.msra.mxu0 %v3035_v32  ;;  %3170 = vrcp.f32 %v4325_v50  ;;  %v2231_v0 = vsub.f32 1.0, %v2230_v58  ;;  %v2196_v28 = vand.u32 2147483647, %v4332_v52  ;;  %vm2235_vm13 = vweird.f32 %v4330_v43 }
 0x7ee   : > { %vm2192_vm14 = vweird.f32 %v4332_v52  ;;  %v2199_v42 = vor.u32 1.1754944e-38, %v2198_v44  ;;  %v2275_v63 = vmul.f32 %v4271_v12, %v2228_v4  ;;  %vm2236_vm4 = vmor %vm2234_vm15, %vm2235_vm13  ;;  %vm2239_vm5 = vcmp.eq.f32.partialorder %v2238_v23, 8.507059e+37  ;;  %v308_v23 = vld [vmem:[#allocation8 + $0x10] sm:$0xff] }
 0x7ef   : > { %2306 = vmatpush.msra.mxu0 %v3036_v9  ;;  %v2232_v34 = vmul.f32 %v4330_v43, %v2231_v0  ;;  %vm2197_vm3 = vcmp.eq.f32.partialorder %v2196_v28, 8.507059e+37 }
 0x7f0   : > { %2841 = vmatmul.msk.f32.vlgmr.msra.gmra.mxu0 %vm493_vm1, %v2271_v46 }
 0x7f1   : > { %v2233_v51 = vadd.f32 %v4330_v43, %v2232_v34 }
 0x7f2   : > { %v3169_v18 = vpop.eup %3168  ;;  %v3044_v48 = vpop.permute.xlu2 %3043 }
 0x7f3   : > { %v2188_v15 = vmul.f32 %v3169_v18, %v4332_v52  ;;  %v3046_v36 = vunpack.i.h.bf16 %v3044_v48  ;;  %v3045_v45 = vunpack.i.l.bf16 %v3044_v48  ;;  %v4348_v37 = vpop.xlane.xlu1 %2157  ;;  %v3171_v16 = vpop.eup %3170  ;;  %vm2193_vm12 = vweird.f32 %v3169_v18 }
 0x7f4   : > { %3172 = vrcp.f32 %v4348_v37  ;;  %v2244_v29 = vmul.f32 %v3171_v16, %v4325_v50  ;;  %vm2194_vm2 = vmor %vm2192_vm14, %vm2193_vm12  ;;  %v2237_v52 = vsel %vm2236_vm4, %v4330_v43, %v2233_v51  ;;  %vm2249_vm6 = vweird.f32 %v3171_v16 }
 0x7f5   : > { %v2189_v19 = vsub.f32 1.0, %v2188_v15  ;;  %2340 = vmatpush.msra.mxu1 %v3045_v45  ;;  %v2242_v12 = vsel %vm2239_vm5, %v2241_v3, %v2237_v52  ;;  %v2254_v43 = vand.u32 2147483648, %v4325_v50  ;;  %vm2250_vm8 = vmor %vm2248_vm7, %vm2249_vm6  ;;  %v2268_v48 = vand.u32 2147483648, %v4348_v37 }
 0x7f6   : > { %v3029_v56 = vpop.permute.xlu0 %3028  ;;  %v2245_v58 = vsub.f32 1.0, %v2244_v29  ;;  %v2276_v31 = vmul.f32 %v4277_v55, %v2242_v12  ;;  %vm2262_vm11 = vweird.f32 %v4348_v37  ;;  %vm2531_vm4 = vcmask 195584  }
 0x7f7   : > { %v2190_v21 = vmul.f32 %v3169_v18, %v2189_v19  ;;  %v3030_v47 = vunpack.i.l.bf16 %v3029_v56  ;;  %2341 = vmatpush.msra.mxu1 %v3046_v36  ;;  %v3031_v6 = vunpack.i.h.bf16 %v3029_v56  ;;  %v2255_v35 = vor.u32 1.1754944e-38, %v2254_v43 }
 0x7f8   : > { %2842 = vmatmul.msk.f32.gmra.mxu0 %vm493_vm1, %v2272_v53  ;;  %v2246_v49 = vmul.f32 %v3171_v16, %v2245_v58  ;;  %v2269_v34 = vor.u32 1.1754944e-38, %v2268_v48  ;;  %vm2544_vm5 = vcmask 261120  }
 0x7f9   : > { %v2191_v11 = vadd.f32 %v3169_v18, %v2190_v21  ;;  %2375 = vmatpush.msrb.mxu2 %v3030_v47 }
 0x7fa   : > { %v3173_v46 = vpop.eup %3172  ;;  %v2247_v57 = vadd.f32 %v3171_v16, %v2246_v49 }
 0x7fb   : > { %v2195_v9 = vsel %vm2194_vm2, %v3169_v18, %v2191_v11  ;;  %2376 = vmatpush.msrb.mxu2 %v3031_v6  ;;  %v2258_v24 = vmul.f32 %v3173_v46, %v4348_v37  ;;  %vm2263_vm10 = vweird.f32 %v3173_v46 }
 0x7fc   : > { %v2200_v32 = vsel %vm2197_vm3, %v2199_v42, %v2195_v9  ;;  %2845 = vmatmul.msk.f32.vlgmr.msrb.gmra.mxu2 %vm493_vm1, %v2275_v63  ;;  %v2251_v0 = vsel %vm2250_vm8, %v3171_v16, %v2247_v57  ;;  %vm2264_vm12 = vmor %vm2262_vm11, %vm2263_vm10  ;;  %v2428_v42 = vpop.permute.xlu2 %2427  ;;  %v309_v63 = vld [vmem:[#allocation8 + $0x18] sm:$0xff]  ;;  %v307_v9 = vld [vmem:[#allocation8 + $0x8] sm:$0xff] }
 0x7fd   : > { %v2273_v41 = vmul.f32 %v4283_v30, %v2200_v32  ;;  %v2259_v14 = vsub.f32 1.0, %v2258_v24  ;;  %v2252_v30 = vand.u32 2147483647, %v4325_v50  ;;  %v2266_v50 = vand.u32 2147483647, %v4348_v37  ;;  %2581 = vmatpush.msrb.mxu0 %v309_v63  ;;  %2869 = vmatpush.msra.mxu2 %v309_v63 }
 0x7ff   : > { %2843 = vmatmul.msk.f32.vlgmr.msra.gmra.mxu1 %vm493_vm1, %v2273_v41  ;;  %v2260_v38 = vmul.f32 %v3173_v46, %v2259_v14  ;;  %vm2253_vm9 = vcmp.eq.f32.partialorder %v2252_v30, 8.507059e+37  ;;  %vm2267_vm13 = vcmp.eq.f32.partialorder %v2266_v50, 8.507059e+37  ;;  %2582 = vmatpush.msrb.mxu0 %v308_v23  ;;  %v2515_v41 = vsel %vm324_vm0, %v3823_v26, %v2428_v42 }
 0x800   : > { %v2256_v18 = vsel %vm2253_vm9, %v2255_v35, %v2251_v0  ;;  %2870 = vmatpush.msra.mxu2 %v308_v23 }
 0x801   : > { %v2261_v15 = vadd.f32 %v3173_v46, %v2260_v38  ;;  %v2277_v13 = vmul.f32 %v4275_v25, %v2256_v18  ;;  %2583 = vmatpush.msrb.mxu0 %v307_v9 }
 0x802   : > { %2871 = vmatpush.msra.mxu2 %v307_v9 }
 0x803   : > { %v2265_v62 = vsel %vm2264_vm12, %v3173_v46, %v2261_v15 }
 0x804   : > { %2846 = vmatmul.msk.f32.gmra.mxu2 %vm493_vm1, %v2276_v31  ;;  %v2270_v36 = vsel %vm2267_vm13, %v2269_v34, %v2265_v62 }
 0x805   : > { %v2278_v45 = vmul.f32 %v4287_v7, %v2270_v36 }
 0x80a   : > { %v3039_v1 = vpop.permute.xlu1 %3038 }
 0x80b   : > { %v3041_v5 = vunpack.i.h.bf16 %v3039_v1  ;;  %v3040_v55 = vunpack.i.l.bf16 %v3039_v1 }
 0x80d   : > { %2410 = vmatpush.msra.mxu3 %v3040_v55 }
 0x80f   : > { %2411 = vmatpush.msra.mxu3 %v3041_v5 }
 0x810   : > { %2847 = vmatmul.msk.f32.vlgmr.msra.gmra.mxu3 %vm493_vm1, %v2277_v13 }
 0x812   : > { %v2460_v3 = vpop.permute.xlu1 %2459 }
 0x813   : > { %v2523_v46 = vsel %vm493_vm1, %v2515_v41, %v2460_v3 }
 0x818   : > { %2848 = vmatmul.msk.f32.gmra.mxu3 %vm493_vm1, %v2278_v45 }
 0x81a   : > { %v2430_v24 = vpop.permute.xlu1 %2429 }
 0x821   : > { %v2146_v19 = vpop.xlane.xlu0 %2145 }
 0x822   : > { %3174 = vrcp.f32 %v2146_v19  ;;  %v2212_v25 = vand.u32 2147483648, %v2146_v19  ;;  %v2210_v37 = vand.u32 2147483647, %v2146_v19  ;;  %vm2206_vm15 = vweird.f32 %v2146_v19  ;;  %v2464_v31 = vpop.permute.xlu1 %2463 }
 0x824   : > { %v2213_v21 = vor.u32 1.1754944e-38, %v2212_v25  ;;  %vm2211_vm3 = vcmp.eq.f32.partialorder %v2210_v37, 8.507059e+37 }
 0x828   : > { %v3175_v16 = vpop.eup %3174 }
 0x829   : > { %v2202_v4 = vmul.f32 %v3175_v16, %v2146_v19  ;;  %vm2207_vm14 = vweird.f32 %v3175_v16 }
 0x82a   : > { %vm2208_vm2 = vmor %vm2206_vm15, %vm2207_vm14  ;;  %v2472_v14 = vpop.permute.xlu1 %2471 }
 0x82b   : > { %v2203_v44 = vsub.f32 1.0, %v2202_v4 }
 0x82d   : > { %v2204_v56 = vmul.f32 %v3175_v16, %v2203_v44 }
 0x82f   : > { %v2205_v53 = vadd.f32 %v3175_v16, %v2204_v56 }
 0x831   : > { %v2209_v28 = vsel %vm2208_vm2, %v3175_v16, %v2205_v53 }
 0x832   : > { %v2214_v47 = vsel %vm2211_vm3, %v2213_v21, %v2209_v28 }
 0x833   : > { %v2274_v7 = vmul.f32 %v4309_v17, %v2214_v47 }
 0x834   : > { %v2438_v57 = vpop.permute.xlu0 %2437 }
 0x835   : > { %2844 = vmatmul.msk.f32.gmra.mxu1 %vm493_vm1, %v2274_v7 }
 0x83c   : > { %v2434_v43 = vpop.permute.xlu0 %2433 }
 0x86d   : > { %v2308_v27 = vpop.f32.mrf.mxu0 }
 0x86e   : > { %2491 = vrot.lane.b32.xlu2 %v2308_v27, %s3404_s7 }
 0x875   : > { %v2311_v51 = vpop.f32.mrf.mxu0 }
 0x876   : > { %2493 = vrot.lane.b32.xlu1 %v2311_v51, %s3404_s7 }
 0x87c   : > { %v2343_v29 = vpop.f32.mrf.mxu1 }
 0x87d   : > { %2495 = vrot.lane.b32.xlu0 %v2343_v29, %s3404_s7 }
 0x87f   : > { %v2378_v11 = vpop.f32.mrf.mxu2 }
 0x887   : > { %v2381_v6 = vpop.f32.mrf.mxu2 }
 0x888   : > { %2501 = vrot.lane.b32.xlu1 %v2381_v6, %s3404_s7 }
 0x890   : > { %2465 = vrot.lane.b32.xlu1 %v4238_v2, %s3403_s30  ;;  %v2462_v2 = vpop.permute.xlu2 %2461 }
 0x893   : > { %v2413_v17 = vpop.f32.mrf.mxu3 }
 0x894   : > { %2503 = vrot.lane.b32.xlu2 %v2413_v17, %s3404_s7 }
 0x898   : > { %2473 = vrot.lane.b32.xlu1 %v4245_v40, %s3403_s30  ;;  %v306_v40 = vld [vmem:[#allocation8] sm:$0xff]  ;;  %v2470_v52 = vpop.permute.xlu2 %2469 }
 0x899   : > { %2584 = vmatpush.msrb.mxu0 %v306_v40  ;;  %2872 = vmatpush.msra.mxu2 %v306_v40 }
 0x89b   : > { %v2416_v32 = vpop.f32.mrf.mxu3 }
 0x89c   : > { %2441 = vrot.lane.b32.xlu2 %v4034_v54, %s3402_s9 }
 0x8a0   : > { %2467 = vrot.lane.b32.xlu1 %v4236_v20, %s3403_s30  ;;  %v2432_v54 = vpop.permute.xlu2 %2431 }
 0x8a1   : > { %v2517_v38 = vsel %vm324_vm0, %v3840_v60, %v2432_v54 }
 0x8a2   : > { %v2525_v1 = vsel %vm493_vm1, %v2517_v38, %v2464_v31 }
 0x8a4   : > { %2505 = vrot.lane.b32.xlu2 %v2416_v32, %s3404_s7 }
 0x8a8   : > { %v2440_v20 = vpop.permute.xlu2 %2439 }
 0x8a9   : > { %v2521_v60 = vsel %vm324_vm0, %v3842_v22, %v2440_v20  ;;  %v2518_v22 = vsel %vm324_vm0, %v3848_v10, %v2434_v43  ;;  %v3047_v10 = vld [vmem:[%s4484_s4] ss:$0 sm:$0xff] }
 0x8aa   : > { %v2529_v50 = vsel %vm493_vm1, %v2521_v60, %v2472_v14 }
 0x8ac   : > { %2499 = vrot.lane.b32.xlu2 %v2378_v11, %s3404_s7 }
 0x8b2   : > { %v2346_v58 = vpop.f32.mrf.mxu1 }
 0x8b3   : > { %2497 = vrot.lane.b32.xlu0 %v2346_v58, %s3404_s7  ;;  %s3330_s7 = scalar_lea.hbm %s4485_s5, 128 }
 0x8b4   : > { %p3332_p9 = scmp.lt.s32.totalorder %s3330_s7, %s3326_s15 }
 0x8b6   : > { %p3333_p2 = por %p3332_p9, %p3331_p11 }
 0x8b8   : > { %p3334_p10 = pnand %p3333_p2, %p3329_p8 }
 0x8bb   : > { %2435 = vrot.lane.b32.xlu0 %v4017_v33, %s3402_s9  ;;  %v2516_v33 = vsel %vm324_vm0, %v3834_v39, %v2430_v24  ;;  %v2520_v39 = vsel %vm324_vm0, %v3844_v61, %v2438_v57 }
 0x8bc   : > { %v2524_v0 = vsel %vm493_vm1, %v2516_v33, %v2462_v2  ;;  %v2528_v55 = vsel %vm493_vm1, %v2520_v39, %v2470_v52 }
 0x8c8   : > { %v2492_v12 = vpop.permute.xlu2 %2491 }
 0x8c9   : > { %v2532_v49 = vsel %vm2531_vm4, %v2523_v46, %v2492_v12 }
 0x8ca   : > { %2849 = vmatmul.msk.f32.vlgmr.msrb.gmra.mxu0 %vm2544_vm5, %v2532_v49 }
 0x8e8   : > { %v2494_v30 = vpop.permute.xlu1 %2493 }
 0x8e9   : > { %v2533_v26 = vsel %vm2531_vm4, %v2524_v0, %v2494_v30 }
 0x8ea   : > { %2850 = vmatmul.msk.f32.gmra.mxu0 %vm2544_vm5, %v2533_v26 }
 0x8ee   : > { %v2504_v5 = vpop.permute.xlu2 %2503 }
 0x8ef   : > { %v2496_v35 = vpop.permute.xlu0 %2495  ;;  %v2538_v34 = vsel %vm2531_vm4, %v2529_v50, %v2504_v5 }
 0x8f0   : > { %v2534_v18 = vsel %vm2531_vm4, %v2525_v1, %v2496_v35 }
 0x8f2   : > { %2851 = vmatmul.msk.f32.gmra.mxu0 %vm2544_vm5, %v2534_v18 }
 0x8f6   : > { %v2442_v13 = vpop.permute.xlu2 %2441 }
 0x8f7   : > { %v2522_v61 = vsel %vm324_vm0, %v3846_v8, %v2442_v13 }
 0x8fa   : > { %v2502_v15 = vpop.permute.xlu1 %2501 }
 0x8fb   : > { %v2537_v48 = vsel %vm2531_vm4, %v2528_v55, %v2502_v15 }
 0x8fc   : > { %2854 = vmatmul.msk.f32.vlgmr.msra.gmra.mxu2 %vm2544_vm5, %v2537_v48 }
 0x8fe   : > { %v2506_v45 = vpop.permute.xlu2 %2505 }
 0x902   : > { %v2466_v62 = vpop.permute.xlu1 %2465 }
 0x903   : > { %v2526_v4 = vsel %vm493_vm1, %v2518_v22, %v2466_v62 }
 0x904   : > { %2855 = vmatmul.msk.f32.gmra.mxu2 %vm2544_vm5, %v2538_v34 }
 0x906   : > { %v2500_v53 = vpop.permute.xlu2 %2499 }
 0x90a   : > { %v2474_v36 = vpop.permute.xlu1 %2473 }
 0x90b   : > { %v2530_v19 = vsel %vm493_vm1, %v2522_v61, %v2474_v36 }
 0x90c   : > { %v2539_v16 = vsel %vm2531_vm4, %v2530_v19, %v2506_v45 }
 0x90d   : > { %2856 = vmatmul.msk.f32.gmra.mxu2 %vm2544_vm5, %v2539_v16 }
 0x912   : > { %v2468_v56 = vpop.permute.xlu1 %2467 }
 0x925   : > { %v2498_v44 = vpop.permute.xlu0 %2497 }
 0x926   : > { %v2535_v25 = vsel %vm2531_vm4, %v2526_v4, %v2498_v44 }
 0x927   : > { %2852 = vmatmul.msk.f32.gmra.mxu0 %vm2544_vm5, %v2535_v25 }
 0x92d   : > { %v2436_v8 = vpop.permute.xlu0 %2435 }
 0x92e   : > { %v2519_v37 = vsel %vm324_vm0, %v3838_v59, %v2436_v8 }
 0x92f   : > { %v2527_v21 = vsel %vm493_vm1, %v2519_v37, %v2468_v56 }
 0x930   : > { %v2536_v28 = vsel %vm2531_vm4, %v2527_v21, %v2500_v53 }
 0x931   : > { %2853 = vmatmul.msk.f32.gmra.mxu0 %vm2544_vm5, %v2536_v28 }
 0x947   : > { %v2586_v47 = vpop.f32.mrf.mxu0 }
 0x948   : > { %v2587_v7 = vadd.f32 %v3047_v10, %v2586_v47 }
 0x94a   : > { %2610 = vst [vmem:[%s295_s12] sm:$0xff] %v2587_v7 }
 0x967   : > { %v2589_v27 = vpop.f32.mrf.mxu0 }
 0x968   : > { %v2590_v51 = vadd.f32 %v3047_v10, %v2589_v27 }
 0x96a   : > { %2611 = vst [vmem:[%s295_s12 + $0x8] sm:$0xff] %v2590_v51 }
 0x96f   : > { %v2592_v59 = vpop.f32.mrf.mxu0 }
 0x970   : > { %v2593_v29 = vadd.f32 %v3047_v10, %v2592_v59 }
 0x972   : > { %2612 = vst [vmem:[%s295_s12 + $0x10] sm:$0xff] %v2593_v29 }
 0x97f   : > { %v2601_v11 = vpop.f32.mrf.mxu2 }
 0x980   : > { %v2602_v6 = vadd.f32 %v3047_v10, %v2601_v11 }
 0x982   : > { %2615 = vst [vmem:[%s295_s12 + $0x28] sm:$0xff] %v2602_v6 }
 0x987   : > { %v2604_v17 = vpop.f32.mrf.mxu2 }
 0x988   : > { %v2605_v42 = vadd.f32 %v3047_v10, %v2604_v17 }
 0x98a   : > { %2616 = vst [vmem:[%s295_s12 + $0x30] sm:$0xff] %v2605_v42 }
 0x990   : > { %v2607_v63 = vpop.f32.mrf.mxu2 }
 0x991   : > { %v2608_v23 = vadd.f32 %v3047_v10, %v2607_v63 }
 0x993   : > { %2617 = vst [vmem:[%s295_s12 + $0x38] sm:$0xff] %v2608_v23 }
 0x9a4   : > { %v2595_v9 = vpop.f32.mrf.mxu0 }
 0x9a5   : > { %v2596_v2 = vadd.f32 %v3047_v10, %v2595_v9 }
 0x9a7   : > { %2613 = vst [vmem:[%s295_s12 + $0x18] sm:$0xff] %v2596_v2 }
 0x9ae   : > { %v2598_v32 = vpop.f32.mrf.mxu0 }
 0x9af   : > { %v2599_v40 = vadd.f32 %v3047_v10, %v2598_v32 }
 0x9b1   : > { %2614 = vst [vmem:[%s295_s12 + $0x20] sm:$0xff] %v2599_v40 }
 0x9b2   : > { %3337 = shalt.err (!%p3334_p10)
}
 0x9b3   : > { %s3405_s17 = smov 128  }
 0x9b4   : > { %2887 = dma.vmem_to_hbm [thread:$0]  (%p3527_p3), %s2633_s28, 1024, %s2635_s13, %s2619_s10, %s3405_s17, %s3405_s17, %s3402_s9  }
 0x9b5 PF: > { %s2649_s12 = sand.u32 1, %s3372_s18   ;;  %p4496_p12 = scmp.ge.s32.totalorder %s3384_s21, 2 }
 0x9b6   : > { %s2650_s11 = scalar_lea.sflag [#allocation4], %s2649_s12 }
 0x9b7   : > { %p2904_p13 = pnand %p4496_p12, %p3471_p6 }
 0x9b9   : > { %p2905_p0 = pneg %p2904_p13 }
 0x9bb   : > { %3367 = dma.done.wait (%p2905_p0), %s2650_s11, 1024  }
 0x9bc   : > { %3369 = vsyncadd (%p2905_p0), %s2650_s11, 4294966272  ;;  %p20_p5 = scmp.ge.s32.totalorder %s3509_s27, 4   ;;  %s4497_s18 = smov %s3376_s19 }
 0x9bd   : > { %s4498_s19 = smov %s3380_s20  ;;  %s4499_s20 = smov %s3523_s6 }
 0x9be   : > { %s4500_s21 = smov %s3509_s27  ;;  %22 = sbr.rel (!%p20_p5) target bundleno = 7 (0x7), region = 100 }
 0x9c3   :  { %2656 = vsyncpa [#allocation3], 1 }
 0x9c4   :  { %2658 = vsyncpa [#allocation3 + $0x1], 1 }
 0x9c5   :  { %2659 = vsyncpa [#allocation6], 1 }
 0x9c6   :  { %2660 = vsyncpa [#allocation9], 1 }
 0x9c7   :  { %2661 = vsyncpa [#allocation4], 1 }
 0x9c8   :  { %2663 = vsyncpa [#allocation4 + $0x1], 1 }

</bundles_post_ra>
